<compile_context>
chip_gen: v7x
topology: tpu7x:2x2x1
jax: 0.10.0
libtpu: 0.0.40
codegen_flags: <defaults>
</compile_context>

<pallas_src>
import functools
import math

import jax
import jax.numpy as jnp
from jax import lax
from jax.experimental import pallas as pl
from jax.experimental.pallas import tpu as pltpu


def _round_up(x, m):
    return (x + m - 1) // m * m


def _vmem_capacity_bytes():
    """Physical VMEM per TensorCore; conservative fallback if unavailable."""
    try:
        info = pltpu.get_tpu_info()
        cap = getattr(info, "vmem_capacity_bytes", None)
        if cap:
            return int(cap)
    except Exception:
        pass
    return 64 * 1024 * 1024  # assume the smallest (v7x-sized) VMEM


def _sae_topk_kernel(k, n_f, x_ref, wenc_ref, benc_ref, wdec_ref, bdec_ref,
                     xhat_ref, enc_ref,
                     acts_ref, cand_ref, thr_ref, acc_ref, xm_ref):
    """Grid = (batch tiles, 2 phases, dict tiles)."""
    p = pl.program_id(1)   # 0 = encode, 1 = mask + decode
    j = pl.program_id(2)   # dictionary (F) tile index
    neg_inf = jnp.float32(-jnp.inf)

    # ----- Start of phase 0: hoist (x - b_dec) & init candidate buffer -------
    @pl.when((p == 0) & (j == 0))
    def _prep():
        xm_ref[...] = (x_ref[...].astype(jnp.float32)
                       - bdec_ref[...].astype(jnp.float32)).astype(xm_ref.dtype)
        cand_ref[...] = jnp.full_like(cand_ref, neg_inf)

    # ----- Phase 0: encoder tile -> VMEM acts scratch + streaming top-k ------
    @pl.when(p == 0)
    def _encode():
        # MXU in the weights' native dtype (bf16 stays bf16), f32 accumulate.
        pre = jnp.dot(xm_ref[...], wenc_ref[...],
                      preferred_element_type=jnp.float32)
        pre = pre + benc_ref[...].astype(jnp.float32)
        acts = jnp.maximum(pre, 0.0)                           # [TB, TF] f32
        acts_s = acts.astype(acts_ref.dtype)
        acts_ref[j] = acts_s
        # Use the values phase 1 will actually see (post storage-dtype cast)
        # so threshold membership is self-consistent.
        acts_q = acts_s.astype(jnp.float32)

        # Streaming per-row top-k: fuse "extract top-k of this tile" with the
        # merge into the running candidate buffer (k rounds of row-max + mask
        # over the in-flight tile + the small [TB, KC] buffer).
        cand0 = cand_ref[...]                                  # [TB, KC] f32
        out0 = jnp.full_like(cand0, neg_inf)
        lane = lax.broadcasted_iota(jnp.int32, cand0.shape, 1)

        def body(r, carry):
            a, c, out = carry
            m = jnp.maximum(jnp.max(a, axis=-1, keepdims=True),
                            jnp.max(c, axis=-1, keepdims=True))  # [TB, 1]
            out = jnp.where(lane == r, m, out)
            # TODO(synk): `>= m` removes ALL entries tied with the running
            # max, so exact ties among positive activations can keep >k
            # nonzeros in `enc` (torch.topk keeps exactly k).
            a = jnp.where(a >= m, neg_inf, a)
            c = jnp.where(c >= m, neg_inf, c)
            return a, c, out

        _, _, new_cand = lax.fori_loop(0, k, body, (acts_q, cand0, out0))
        cand_ref[...] = new_cand

    # ----- End of phase 0: per-row k-th largest activation (threshold) -------
    @pl.when((p == 0) & (j == n_f - 1))
    def _threshold():
        cand = cand_ref[...]                                   # [TB, KC]
        lane = lax.broadcasted_iota(jnp.int32, cand.shape, 1)
        thr_ref[...] = jnp.min(
            jnp.where(lane < k, cand, jnp.float32(jnp.inf)),
            axis=-1, keepdims=True)                            # [TB, 1]

    # ----- Phase 1: mask to top-k, decode, accumulate -------------------------
    @pl.when((p == 1) & (j == 0))
    def _init_acc():
        acc_ref[...] = jnp.zeros_like(acc_ref)

    @pl.when(p == 1)
    def _decode():
        acts = acts_ref[j].astype(jnp.float32)                 # [TB, TF]
        enc = jnp.where(acts >= thr_ref[...], acts, 0.0)
        enc_ref[...] = enc.astype(enc_ref.dtype)
        # TODO(synk): a k-sparse decode (gather only the k selected rows of
        # W_dec per example via scalar-prefetch indices) would cut decoder
        # FLOPs / HBM bytes by ~F/k; dense decode kept for simplicity.
        acc_ref[...] += jnp.dot(enc.astype(wdec_ref.dtype), wdec_ref[...],
                                preferred_element_type=jnp.float32)

    @pl.when((p == 1) & (j == n_f - 1))
    def _finalize():
        xhat_ref[...] = (acc_ref[...] +
                         bdec_ref[...].astype(jnp.float32)).astype(xhat_ref.dtype)


def prepare_sae_params(W_enc_FD, b_enc_F, W_dec_DF, b_dec_D, *, f_tile=512):
    """One-time transpose + pad of the parameters (do NOT redo every forward)."""
    F, D = W_enc_FD.shape
    assert W_dec_DF.shape == (D, F)
    assert b_enc_F.shape == (F,)
    assert b_dec_D.shape == (D,)
    # 256-alignment fills the 256-wide MXU on v6e/v7x; 128 is enough (and
    # cheaper) for small activation dims (irrelevant on v5e's 128-wide MXU).
    Dp = _round_up(D, 256) if D > 128 else _round_up(D, 128)
    TF = _round_up(min(f_tile, _round_up(F, 128)), 128)
    Fp = _round_up(F, TF)

    pad2 = lambda a, r, c: jnp.pad(a, ((0, r - a.shape[0]), (0, c - a.shape[1])))
    return dict(
        wenc_df=pad2(W_enc_FD.T, Dp, Fp),        # [Dp, Fp], native dtype
        wdec_fd=pad2(W_dec_DF.T, Fp, Dp),        # [Fp, Dp], native dtype
        benc=pad2(b_enc_F[None, :], 1, Fp),      # [1, Fp]
        bdec=pad2(b_dec_D[None, :], 1, Dp),      # [1, Dp]
        D=D, F=F, Dp=Dp, Fp=Fp, TF=TF,
    )


def _vmem_estimate_bytes(TB, TF, Dp, n_f, KC, x_isz, w_isz, a_isz):
    scratch = (n_f * TB * TF * a_isz            # acts scratch
               + TB * KC * 4                    # streaming top-k candidates
               + TB * 128 * 4                   # threshold (lane-padded)
               + TB * Dp * 4                    # decode accumulator
               + TB * Dp * w_isz)               # hoisted (x - b_dec)
    blocks = 2 * (TB * Dp * x_isz               # x in (double-buffered)
                  + Dp * TF * w_isz             # W_enc tile
                  + 8 * TF * w_isz              # b_enc tile
                  + TF * Dp * w_isz             # W_dec tile
                  + 8 * Dp * w_isz              # b_dec
                  + TB * Dp * x_isz             # x_hat out
                  + TB * TF * x_isz)            # enc out
    return scratch + blocks


def sae_topk_forward_prepared(x, params, k, *, batch_tile=256, acts_dtype=None):
    """Top-K SAE forward. x: [B, D]. Returns (x_hat [B, D], encoded [B, F])."""
    B, D = x.shape
    assert D == params["D"]
    F, Dp, Fp, TF = params["F"], params["Dp"], params["Fp"], params["TF"]
    assert 1 <= k <= F, "k must be in [1, dict_size]"
    n_f = Fp // TF
    KC = _round_up(k, 128)
    acts_dtype = jnp.dtype(acts_dtype or x.dtype)

    x_isz = jnp.dtype(x.dtype).itemsize
    w_isz = jnp.dtype(params["wenc_df"].dtype).itemsize
    a_isz = acts_dtype.itemsize

    # Generation-aware VMEM budget: v7x has 64 MiB/TC, v5e/v6e 128 MiB.
    cap = _vmem_capacity_bytes()
    vmem_limit = max(32 * 1024 * 1024, cap - 16 * 1024 * 1024)
    budget = int(vmem_limit * 0.85)

    # Large batch tile amortizes weight re-streaming from HBM; shrink to fit.
    TB = max(128, min(_round_up(batch_tile, 128), _round_up(B, 128)))
    while TB > 128 and _vmem_estimate_bytes(TB, TF, Dp, n_f, KC,
                                            x_isz, w_isz, a_isz) > budget:
        TB -= 128
    # TODO(synk): if even TB=128 overflows (huge dict_size on v7x), spill the
    # acts scratch to HBM (write raw acts to `enc` in phase 0, re-read them in
    # phase 1) instead of shrinking the batch tile further.

    Bp = _round_up(B, TB)
    n_b = Bp // TB

    xp = jnp.pad(x, ((0, Bp - B), (0, Dp - D)))

    kernel = functools.partial(_sae_topk_kernel, k, n_f)

    nbytes = lambda a: int(a.size) * a.dtype.itemsize
    cost = pl.CostEstimate(
        flops=4 * Bp * Dp * Fp,                  # encoder + decoder matmuls
        transcendentals=0,
        bytes_accessed=(2 * nbytes(xp) + Bp * Fp * x_isz
                        + n_b * (nbytes(params["wenc_df"])
                                 + nbytes(params["wdec_fd"])
                                 + nbytes(params["benc"])
                                 + nbytes(params["bdec"]))),
    )

    xhat_p, enc_p = pl.pallas_call(
        kernel,
        out_shape=(
            jax.ShapeDtypeStruct((Bp, Dp), x.dtype),
            jax.ShapeDtypeStruct((Bp, Fp), x.dtype),
        ),
        grid_spec=pltpu.PrefetchScalarGridSpec(
            num_scalar_prefetch=0,
            grid=(n_b, 2, n_f),
            in_specs=[
                # x tile: constant across (phase, F tile) -> fetched once per
                # batch tile.  TODO(synk): pipeline_mode=pl.Buffered(1) on the
                # x / bias blocks would reclaim their second pipeline buffer.
                pl.BlockSpec((TB, Dp), lambda i, p, j: (i, 0)),
                # W_enc / b_enc tiles advance only during phase 0 (pinned to
                # tile 0 in phase 1 so no redundant DMA is issued).
                pl.BlockSpec((Dp, TF), lambda i, p, j: (0, j * (1 - p))),
                pl.BlockSpec((1, TF),  lambda i, p, j: (0, j * (1 - p))),
                # W_dec tile advances only during phase 1.
                pl.BlockSpec((TF, Dp), lambda i, p, j: (j * p, 0)),
                pl.BlockSpec((1, Dp),  lambda i, p, j: (0, 0)),
            ],
            out_specs=[
                pl.BlockSpec((TB, Dp), lambda i, p, j: (i, 0)),
                # enc tile: written only during phase 1; pinned to tile 0 in
                # phase 0 so no garbage block write-backs happen.
                pl.BlockSpec((TB, TF), lambda i, p, j: (i, j * p)),
            ],
            scratch_shapes=[
                pltpu.VMEM((n_f, TB, TF), acts_dtype),          # post-ReLU acts
                pltpu.VMEM((TB, KC), jnp.float32),              # top-k candidates
                pltpu.VMEM((TB, 1), jnp.float32),               # k-th value (thr)
                pltpu.VMEM((TB, Dp), jnp.float32),              # decode accum
                pltpu.VMEM((TB, Dp), params["wenc_df"].dtype),  # hoisted x - b_dec
            ],
        ),
        compiler_params=pltpu.CompilerParams(
            dimension_semantics=("parallel", "arbitrary", "arbitrary"),
            vmem_limit_bytes=int(vmem_limit),
        ),
        cost_estimate=cost,
    )(xp, params["wenc_df"], params["benc"], params["wdec_fd"], params["bdec"])

    return xhat_p[:B, :D], enc_p[:B, :F]


def sae_topk_forward(x, W_enc_FD, b_enc_F, W_dec_DF, b_dec_D, k, *,
                     batch_tile=256, f_tile=512, acts_dtype=None):
    """Convenience wrapper: prepares (transposes/pads) params then runs."""
    params = prepare_sae_params(W_enc_FD, b_enc_F, W_dec_DF, b_dec_D,
                                f_tile=f_tile)
    return sae_topk_forward_prepared(x, params, k, batch_tile=batch_tile,
                                     acts_dtype=acts_dtype)


def ref_forward(x, W_enc_FD, b_enc_F, W_dec_DF, b_dec_D, k):
    """Pure-JAX reference mirroring the PyTorch module."""
    pre = (x - b_dec_D) @ W_enc_FD.T + b_enc_F
    acts = jax.nn.relu(pre)
    vals, idx = jax.lax.top_k(acts, k)
    B = x.shape[0]
    enc = jnp.zeros_like(acts).at[jnp.arange(B)[:, None], idx].set(vals)
    xhat = enc @ W_dec_DF.T + b_dec_D
    return xhat, enc


def _make_params(key, D, F):
    # Init mirroring AutoEncoderTopK.__init__ (encoder uniform, decoder =
    # enc.T with unit-norm columns).  The module zeroes biases at init; small
    # random biases here exercise the b_enc / b_dec data paths.
    kw, kbe, kbd = jax.random.split(key, 3)
    bound = 1.0 / math.sqrt(D)
    W_enc_FD = jax.random.uniform(kw, (F, D), jnp.float32, -bound, bound)
    W_dec_DF = W_enc_FD.T
    eps = jnp.finfo(jnp.float32).eps
    W_dec_DF = W_dec_DF / (jnp.linalg.norm(W_dec_DF, axis=0, keepdims=True) + eps)
    b_enc_F = 0.05 * jax.random.normal(kbe, (F,), jnp.float32)
    b_dec_D = 0.05 * jax.random.normal(kbd, (D,), jnp.float32)
    return W_enc_FD, b_enc_F, W_dec_DF, b_dec_D


def _check(x, W_enc_FD, b_enc_F, W_dec_DF, b_dec_D, k, **kw):
    x_hat, enc = sae_topk_forward(x, W_enc_FD, b_enc_F, W_dec_DF, b_dec_D, k, **kw)
    jax.block_until_ready((x_hat, enc))
    x_hat_ref, enc_ref = ref_forward(x, W_enc_FD, b_enc_F, W_dec_DF, b_dec_D, k)
    assert x_hat.shape == x_hat_ref.shape and enc.shape == enc_ref.shape
    assert jnp.allclose(x_hat, x_hat_ref, atol=1e-4, rtol=1e-4), \
        float(jnp.max(jnp.abs(x_hat - x_hat_ref)))
    assert jnp.allclose(enc, enc_ref, atol=1e-4, rtol=1e-4), \
        float(jnp.max(jnp.abs(enc - enc_ref)))


if __name__ == "__main__":
    key = jax.random.PRNGKey(0)
    k1, k2, k3, k4 = jax.random.split(key, 4)

    # Case 1: small module-consistent shapes (activation_dim=32, dict_size=256,
    # k=4); f_tile=128 -> two dict tiles so the streaming top-k merge runs.
    W_enc, b_enc, W_dec, b_dec = _make_params(k1, 32, 256)
    x = jax.random.normal(k2, (16, 32), jnp.float32)
    _check(x, W_enc, b_enc, W_dec, b_dec, 4, batch_tile=128, f_tile=128)

    # Case 2: non-multiple sizes, two batch tiles, larger k.
    W_enc, b_enc, W_dec, b_dec = _make_params(k3, 48, 500)
    x = jax.random.normal(k4, (300, 48), jnp.float32)
    _check(x, W_enc, b_enc, W_dec, b_dec, 7, batch_tile=256, f_tile=256)

    print("KERNEL_OK")
</pallas_src>

<mosaic_0001>
module attributes {stable_mosaic.version = 11 : i64} {
  func.func @_sae_topk_kernel(%arg0: i32, %arg1: i32, %arg2: i32, %arg3: memref<128x128xf32, #tpu.memory_space<vmem>>, %arg4: memref<128x128xf32, #tpu.memory_space<vmem>>, %arg5: memref<1x128xf32, #tpu.memory_space<vmem>>, %arg6: memref<128x128xf32, #tpu.memory_space<vmem>>, %arg7: memref<1x128xf32, #tpu.memory_space<vmem>>, %arg8: memref<128x128xf32, #tpu.memory_space<vmem>>, %arg9: memref<128x128xf32, #tpu.memory_space<vmem>>, %arg10: memref<2x128x128xf32, #tpu.memory_space<vmem>>, %arg11: memref<128x128xf32, #tpu.memory_space<vmem>>, %arg12: memref<128x1xf32, #tpu.memory_space<vmem>>, %arg13: memref<128x128xf32, #tpu.memory_space<vmem>>, %arg14: memref<128x128xf32, #tpu.memory_space<vmem>>) attributes {dimension_semantics = [#tpu.dimension_semantics<parallel>, #tpu.dimension_semantics<arbitrary>, #tpu.dimension_semantics<arbitrary>], iteration_bounds = array<i64: 1, 2, 2>, scalar_prefetch = 0 : i64, scratch_operands = 5 : i64, tpu.core_type = #tpu.core_type<tc>, window_params = [{transform_indices = @transform_0, window_bounds = array<i64: 128, 128>}, {transform_indices = @transform_1, window_bounds = array<i64: 128, 128>}, {transform_indices = @transform_2, window_bounds = array<i64: 1, 128>}, {transform_indices = @transform_3, window_bounds = array<i64: 128, 128>}, {pipeline_mode = #tpu.pipeline_mode<synchronous>, transform_indices = @transform_4, window_bounds = array<i64: 1, 128>}, {transform_indices = @transform_5, window_bounds = array<i64: 128, 128>}, {transform_indices = @transform_6, window_bounds = array<i64: 128, 128>}]} {
    %c0_i32 = arith.constant 0 : i32
    %0 = arith.cmpi eq, %arg1, %c0_i32 : i32
    %c0_i32_0 = arith.constant 0 : i32
    %1 = arith.cmpi eq, %arg2, %c0_i32_0 : i32
    %2 = arith.andi %0, %1 : i1
    %3 = arith.extui %2 : i1 to i32
    %cst = arith.constant 0xFF800000 : f32
    %c0_i32_1 = arith.constant 0 : i32
    %4 = arith.cmpi ne, %3, %c0_i32_1 : i32
    scf.if %4 {
      %c0 = arith.constant 0 : index
      %c0_15 = arith.constant 0 : index
      %26 = vector.load %arg3[%c0, %c0_15] : memref<128x128xf32, #tpu.memory_space<vmem>>, vector<128x128xf32>
      %c0_16 = arith.constant 0 : index
      %c0_17 = arith.constant 0 : index
      %27 = vector.load %arg7[%c0_16, %c0_17] : memref<1x128xf32, #tpu.memory_space<vmem>>, vector<1x128xf32>
      %28 = vector.broadcast %27 : vector<1x128xf32> to vector<128x128xf32>
      %29 = arith.subf %26, %28 : vector<128x128xf32>
      %c0_18 = arith.constant 0 : index
      %c0_19 = arith.constant 0 : index
      %30 = vector.load %arg14[%c0_18, %c0_19] : memref<128x128xf32, #tpu.memory_space<vmem>>, vector<128x128xf32>
      tpu.vector_store %arg14[%c0_18, %c0_19], %29 {strides = array<i32>} : memref<128x128xf32, #tpu.memory_space<vmem>>, vector<128x128xf32>,
      %31 = vector.broadcast %cst : f32 to vector<128x128xf32>
      %c0_20 = arith.constant 0 : index
      %c0_21 = arith.constant 0 : index
      %32 = vector.load %arg11[%c0_20, %c0_21] : memref<128x128xf32, #tpu.memory_space<vmem>>, vector<128x128xf32>
      tpu.vector_store %arg11[%c0_20, %c0_21], %31 {strides = array<i32>} : memref<128x128xf32, #tpu.memory_space<vmem>>, vector<128x128xf32>,
    } else {
    }
    %c0_i32_2 = arith.constant 0 : i32
    %5 = arith.cmpi eq, %arg1, %c0_i32_2 : i32
    %6 = arith.extui %5 : i1 to i32
    %cst_3 = arith.constant 0xFF800000 : f32
    %c0_i32_4 = arith.constant 0 : i32
    %7 = arith.cmpi ne, %6, %c0_i32_4 : i32
    scf.if %7 {
      %c0 = arith.constant 0 : index
      %c0_15 = arith.constant 0 : index
      %26 = vector.load %arg14[%c0, %c0_15] : memref<128x128xf32, #tpu.memory_space<vmem>>, vector<128x128xf32>
      %c0_16 = arith.constant 0 : index
      %c0_17 = arith.constant 0 : index
      %27 = vector.load %arg4[%c0_16, %c0_17] : memref<128x128xf32, #tpu.memory_space<vmem>>, vector<128x128xf32>
      %cst_18 = arith.constant dense<0.000000e+00> : vector<128x128xf32>
      %28 = tpu.matmul %26, %27, %cst_18 {dimension_numbers = #tpu.dot_dimension_numbers<[1], [0], [0], [1], [0, 0, 1, 1], [], []>} : vector<128x128xf32>, vector<128x128xf32>, vector<128x128xf32> -> vector<128x128xf32>
      %c0_19 = arith.constant 0 : index
      %c0_20 = arith.constant 0 : index
      %29 = vector.load %arg5[%c0_19, %c0_20] : memref<1x128xf32, #tpu.memory_space<vmem>>, vector<1x128xf32>
      %30 = vector.broadcast %29 : vector<1x128xf32> to vector<128x128xf32>
      %31 = arith.addf %28, %30 : vector<128x128xf32>
      %cst_21 = arith.constant 0.000000e+00 : f32
      %32 = vector.broadcast %cst_21 : f32 to vector<128x128xf32>
      %33 = arith.maximumf %31, %32 : vector<128x128xf32>
      %34 = arith.index_cast %arg2 : i32 to index
      %c0_22 = arith.constant 0 : index
      %c0_23 = arith.constant 0 : index
      %35 = vector.load %arg10[%34, %c0_22, %c0_23] : memref<2x128x128xf32, #tpu.memory_space<vmem>>, vector<1x128x128xf32>
      %36 = vector.shape_cast %35 : vector<1x128x128xf32> to vector<128x128xf32>
      %37 = vector.shape_cast %33 : vector<128x128xf32> to vector<1x128x128xf32>
      tpu.vector_store %arg10[%34, %c0_22, %c0_23], %37 {strides = array<i32>} : memref<2x128x128xf32, #tpu.memory_space<vmem>>, vector<1x128x128xf32>,
      %c0_24 = arith.constant 0 : index
      %c0_25 = arith.constant 0 : index
      %38 = vector.load %arg11[%c0_24, %c0_25] : memref<128x128xf32, #tpu.memory_space<vmem>>, vector<128x128xf32>
      %39 = vector.broadcast %cst_3 : f32 to vector<128x128xf32>
      %40 = tpu.iota {dimensions = array<i32: 1>} : vector<128x128xi32>
      %c0_i32_26 = arith.constant 0 : i32
      %c4_i32 = arith.constant 4 : i32
      %41 = arith.addi %c0_i32_26, %c4_i32 : i32
      %c1_i32_27 = arith.constant 1 : i32
      %42:3 = scf.for %arg15 = %c0_i32_26 to %41 step %c1_i32_27 iter_args(%arg16 = %33, %arg17 = %38, %arg18 = %39) -> (vector<128x128xf32>, vector<128x128xf32>, vector<128x128xf32>)  : i32 {
        %cst_31 = arith.constant dense<0xFF800000> : vector<128xf32>
        %44 = vector.multi_reduction <maximumf>, %arg16, %cst_31 [1] : vector<128x128xf32> to vector<128xf32>
        %45 = vector.shape_cast %44 : vector<128xf32> to vector<128x1xf32>
        %cst_32 = arith.constant dense<0xFF800000> : vector<128xf32>
        %46 = vector.multi_reduction <maximumf>, %arg17, %cst_32 [1] : vector<128x128xf32> to vector<128xf32>
        %47 = vector.shape_cast %46 : vector<128xf32> to vector<128x1xf32>
        %48 = arith.maximumf %45, %47 : vector<128x1xf32>
        %49 = vector.broadcast %arg15 : i32 to vector<128x128xi32>
        %50 = arith.cmpi eq, %40, %49 : vector<128x128xi32>
        %51 = vector.shape_cast %48 : vector<128x1xf32> to vector<128x1xf32>
        %52 = vector.broadcast %51 : vector<128x1xf32> to vector<128x128xf32>
        %53 = arith.select %50, %52, %arg18 : vector<128x128xi1>, vector<128x128xf32>
        %54 = vector.broadcast %48 : vector<128x1xf32> to vector<128x128xf32>
        %55 = arith.cmpf oge, %arg16, %54 : vector<128x128xf32>
        %56 = vector.broadcast %cst_3 : f32 to vector<128x128xf32>
        %57 = arith.select %55, %56, %arg16 : vector<128x128xi1>, vector<128x128xf32>
        %58 = vector.broadcast %48 : vector<128x1xf32> to vector<128x128xf32>
        %59 = arith.cmpf oge, %arg17, %58 : vector<128x128xf32>
        %60 = vector.broadcast %cst_3 : f32 to vector<128x128xf32>
        %61 = arith.select %59, %60, %arg17 : vector<128x128xi1>, vector<128x128xf32>
        scf.yield %57, %61, %53 : vector<128x128xf32>, vector<128x128xf32>, vector<128x128xf32>
      }
      %c4_i32_28 = arith.constant 4 : i32
      %c0_29 = arith.constant 0 : index
      %c0_30 = arith.constant 0 : index
      %43 = vector.load %arg11[%c0_29, %c0_30] : memref<128x128xf32, #tpu.memory_space<vmem>>, vector<128x128xf32>
      tpu.vector_store %arg11[%c0_29, %c0_30], %42#2 {strides = array<i32>} : memref<128x128xf32, #tpu.memory_space<vmem>>, vector<128x128xf32>,
    } else {
    }
    %c0_i32_5 = arith.constant 0 : i32
    %8 = arith.cmpi eq, %arg1, %c0_i32_5 : i32
    %c1_i32 = arith.constant 1 : i32
    %9 = arith.cmpi eq, %arg2, %c1_i32 : i32
    %10 = arith.andi %8, %9 : i1
    %11 = arith.extui %10 : i1 to i32
    %c0_i32_6 = arith.constant 0 : i32
    %12 = arith.cmpi ne, %11, %c0_i32_6 : i32
    scf.if %12 {
      %c0 = arith.constant 0 : index
      %c0_15 = arith.constant 0 : index
      %26 = vector.load %arg11[%c0, %c0_15] : memref<128x128xf32, #tpu.memory_space<vmem>>, vector<128x128xf32>
      %27 = tpu.iota {dimensions = array<i32: 1>} : vector<128x128xi32>
      %c4_i32 = arith.constant 4 : i32
      %28 = vector.broadcast %c4_i32 : i32 to vector<128x128xi32>
      %29 = arith.cmpi slt, %27, %28 : vector<128x128xi32>
      %cst_16 = arith.constant 0x7F800000 : f32
      %30 = vector.broadcast %cst_16 : f32 to vector<128x128xf32>
      %31 = arith.select %29, %26, %30 : vector<128x128xi1>, vector<128x128xf32>
      %cst_17 = arith.constant dense<0x7F800000> : vector<128xf32>
      %32 = vector.multi_reduction <minimumf>, %31, %cst_17 [1] : vector<128x128xf32> to vector<128xf32>
      %33 = vector.shape_cast %32 : vector<128xf32> to vector<128x1xf32>
      %c0_18 = arith.constant 0 : index
      %c0_19 = arith.constant 0 : index
      %34 = vector.load %arg12[%c0_18, %c0_19] : memref<128x1xf32, #tpu.memory_space<vmem>>, vector<128x1xf32>
      tpu.vector_store %arg12[%c0_18, %c0_19], %33 {strides = array<i32>} : memref<128x1xf32, #tpu.memory_space<vmem>>, vector<128x1xf32>,
    } else {
    }
    %c1_i32_7 = arith.constant 1 : i32
    %13 = arith.cmpi eq, %arg1, %c1_i32_7 : i32
    %c0_i32_8 = arith.constant 0 : i32
    %14 = arith.cmpi eq, %arg2, %c0_i32_8 : i32
    %15 = arith.andi %13, %14 : i1
    %16 = arith.extui %15 : i1 to i32
    %c0_i32_9 = arith.constant 0 : i32
    %17 = arith.cmpi ne, %16, %c0_i32_9 : i32
    scf.if %17 {
      %cst_15 = arith.constant 0.000000e+00 : f32
      %26 = vector.broadcast %cst_15 : f32 to vector<128x128xf32>
      %c0 = arith.constant 0 : index
      %c0_16 = arith.constant 0 : index
      %27 = vector.load %arg13[%c0, %c0_16] : memref<128x128xf32, #tpu.memory_space<vmem>>, vector<128x128xf32>
      tpu.vector_store %arg13[%c0, %c0_16], %26 {strides = array<i32>} : memref<128x128xf32, #tpu.memory_space<vmem>>, vector<128x128xf32>,
    } else {
    }
    %c1_i32_10 = arith.constant 1 : i32
    %18 = arith.cmpi eq, %arg1, %c1_i32_10 : i32
    %19 = arith.extui %18 : i1 to i32
    %c0_i32_11 = arith.constant 0 : i32
    %20 = arith.cmpi ne, %19, %c0_i32_11 : i32
    scf.if %20 {
      %26 = arith.index_cast %arg2 : i32 to index
      %c0 = arith.constant 0 : index
      %c0_15 = arith.constant 0 : index
      %27 = vector.load %arg10[%26, %c0, %c0_15] : memref<2x128x128xf32, #tpu.memory_space<vmem>>, vector<1x128x128xf32>
      %28 = vector.shape_cast %27 : vector<1x128x128xf32> to vector<128x128xf32>
      %c0_16 = arith.constant 0 : index
      %c0_17 = arith.constant 0 : index
      %29 = vector.load %arg12[%c0_16, %c0_17] : memref<128x1xf32, #tpu.memory_space<vmem>>, vector<128x1xf32>
      %30 = vector.broadcast %29 : vector<128x1xf32> to vector<128x128xf32>
      %31 = arith.cmpf oge, %28, %30 : vector<128x128xf32>
      %cst_18 = arith.constant 0.000000e+00 : f32
      %32 = vector.broadcast %cst_18 : f32 to vector<128x128xf32>
      %33 = arith.select %31, %28, %32 : vector<128x128xi1>, vector<128x128xf32>
      %c0_19 = arith.constant 0 : index
      %c0_20 = arith.constant 0 : index
      %34 = vector.load %arg9[%c0_19, %c0_20] : memref<128x128xf32, #tpu.memory_space<vmem>>, vector<128x128xf32>
      tpu.vector_store %arg9[%c0_19, %c0_20], %33 {strides = array<i32>} : memref<128x128xf32, #tpu.memory_space<vmem>>, vector<128x128xf32>,
      %c0_21 = arith.constant 0 : index
      %c0_22 = arith.constant 0 : index
      %35 = vector.load %arg13[%c0_21, %c0_22] : memref<128x128xf32, #tpu.memory_space<vmem>>, vector<128x128xf32>
      %c0_23 = arith.constant 0 : index
      %c0_24 = arith.constant 0 : index
      %36 = vector.load %arg6[%c0_23, %c0_24] : memref<128x128xf32, #tpu.memory_space<vmem>>, vector<128x128xf32>
      %cst_25 = arith.constant dense<0.000000e+00> : vector<128x128xf32>
      %37 = tpu.matmul %33, %36, %cst_25 {dimension_numbers = #tpu.dot_dimension_numbers<[1], [0], [0], [1], [0, 0, 1, 1], [], []>} : vector<128x128xf32>, vector<128x128xf32>, vector<128x128xf32> -> vector<128x128xf32>
      %38 = arith.addf %35, %37 : vector<128x128xf32>
      %c0_26 = arith.constant 0 : index
      %c0_27 = arith.constant 0 : index
      %39 = vector.load %arg13[%c0_26, %c0_27] : memref<128x128xf32, #tpu.memory_space<vmem>>, vector<128x128xf32>
      tpu.vector_store %arg13[%c0_26, %c0_27], %38 {strides = array<i32>} : memref<128x128xf32, #tpu.memory_space<vmem>>, vector<128x128xf32>,
    } else {
    }
    %c1_i32_12 = arith.constant 1 : i32
    %21 = arith.cmpi eq, %arg1, %c1_i32_12 : i32
    %c1_i32_13 = arith.constant 1 : i32
    %22 = arith.cmpi eq, %arg2, %c1_i32_13 : i32
    %23 = arith.andi %21, %22 : i1
    %24 = arith.extui %23 : i1 to i32
    %c0_i32_14 = arith.constant 0 : i32
    %25 = arith.cmpi ne, %24, %c0_i32_14 : i32
    scf.if %25 {
      %c0 = arith.constant 0 : index
      %c0_15 = arith.constant 0 : index
      %26 = vector.load %arg13[%c0, %c0_15] : memref<128x128xf32, #tpu.memory_space<vmem>>, vector<128x128xf32>
      %c0_16 = arith.constant 0 : index
      %c0_17 = arith.constant 0 : index
      %27 = vector.load %arg7[%c0_16, %c0_17] : memref<1x128xf32, #tpu.memory_space<vmem>>, vector<1x128xf32>
      %28 = vector.broadcast %27 : vector<1x128xf32> to vector<128x128xf32>
      %29 = arith.addf %26, %28 : vector<128x128xf32>
      %c0_18 = arith.constant 0 : index
      %c0_19 = arith.constant 0 : index
      %30 = vector.load %arg8[%c0_18, %c0_19] : memref<128x128xf32, #tpu.memory_space<vmem>>, vector<128x128xf32>
      tpu.vector_store %arg8[%c0_18, %c0_19], %29 {strides = array<i32>} : memref<128x128xf32, #tpu.memory_space<vmem>>, vector<128x128xf32>,
    } else {
    }
    return
  }
  func.func @transform_0(%arg0: i32, %arg1: i32, %arg2: i32) -> (i32, i32) {
    %c0_i32 = arith.constant 0 : i32
    %c0_i32_0 = arith.constant 0 : i32
    return %arg0, %c0_i32 : i32, i32
  }
  func.func @transform_1(%arg0: i32, %arg1: i32, %arg2: i32) -> (i32, i32) {
    %c1_i32 = arith.constant 1 : i32
    %0 = arith.subi %c1_i32, %arg1 : i32
    %1 = arith.muli %arg2, %0 : i32
    %c0_i32 = arith.constant 0 : i32
    %c0_i32_0 = arith.constant 0 : i32
    return %c0_i32, %1 : i32, i32
  }
  func.func @transform_2(%arg0: i32, %arg1: i32, %arg2: i32) -> (i32, i32) {
    %c1_i32 = arith.constant 1 : i32
    %0 = arith.subi %c1_i32, %arg1 : i32
    %1 = arith.muli %arg2, %0 : i32
    %c0_i32 = arith.constant 0 : i32
    %c0_i32_0 = arith.constant 0 : i32
    return %c0_i32, %1 : i32, i32
  }
  func.func @transform_3(%arg0: i32, %arg1: i32, %arg2: i32) -> (i32, i32) {
    %0 = arith.muli %arg2, %arg1 : i32
    %c0_i32 = arith.constant 0 : i32
    %c0_i32_0 = arith.constant 0 : i32
    return %0, %c0_i32 : i32, i32
  }
  func.func @transform_4(%arg0: i32, %arg1: i32, %arg2: i32) -> (i32, i32) {
    %c0_i32 = arith.constant 0 : i32
    %c0_i32_0 = arith.constant 0 : i32
    %c0_i32_1 = arith.constant 0 : i32
    return %c0_i32, %c0_i32_0 : i32, i32
  }
  func.func @transform_5(%arg0: i32, %arg1: i32, %arg2: i32) -> (i32, i32) {
    %c0_i32 = arith.constant 0 : i32
    %c0_i32_0 = arith.constant 0 : i32
    return %arg0, %c0_i32 : i32, i32
  }
  func.func @transform_6(%arg0: i32, %arg1: i32, %arg2: i32) -> (i32, i32) {
    %0 = arith.muli %arg2, %arg1 : i32
    %c0_i32 = arith.constant 0 : i32
    return %arg0, %0 : i32, i32
  }
}

</mosaic_0001>

<bundles_post_ra>
// kernel: tpu_custom_call.1
= control target key start
LH: loop header
LB: loop body
LE: loop exit
PB: predicated region body
PF: predicated region fallthrough
CT: control target
= control target key end

     0   :  { %s4703_s0 = inlined_call_operand.hbm [shape: f32[128,128], index: 0, kind: input, shape index: {}]   ;;  %s4704_s1 = inlined_call_operand.hbm [shape: f32[128,256], index: 1, kind: input, shape index: {}]   ;;  %s4705_s2 = inlined_call_operand.vmem [shape: f32[1,256], index: 2, kind: input, shape index: {}]   ;;  %s4706_s3 = inlined_call_operand.hbm [shape: f32[256,128], index: 3, kind: input, shape index: {}]   ;;  %s4707_s4 = inlined_call_operand.vmem [shape: f32[1,128], index: 4, kind: input, shape index: {}]   ;;  %s4708_s5 = inlined_call_operand.hbm [shape: f32[128,128], index: 5, kind: output, shape index: {0}]   ;;  %s4709_s6 = inlined_call_operand.hbm [shape: f32[128,256], index: 6, kind: output, shape index: {1}]  }
   0x1   :  { %4736 = sst [smem:[#allocation36_spill]] %s4703_s0 }
   0x2   :  { %4737 = sst [smem:[#allocation37_spill]] %s4704_s1 }
   0x3   :  { %4738 = sst [smem:[#allocation38_spill]] %s4705_s2 }
   0x4   :  { %4739 = sst [smem:[#allocation39_spill]] %s4706_s3 }
   0x5   :  { %4740 = sst [smem:[#allocation40_spill]] %s4707_s4 }
   0x6   :  { %4741 = sst [smem:[#allocation41_spill]] %s4708_s5 }
   0x7   :  { %4742 = sst [smem:[#allocation42_spill]] %s4709_s6 }
   0x8   :  { %12 = vsyncpa [#allocation8], 0 }
   0x9   :  { %13 = vsyncpa [#allocation11], 0 }
   0xa   :  { %15 = vsyncpa [#allocation11 + $0x1], 0 }
   0xb   :  { %16 = vsyncpa [#allocation9], 0 }
   0xc   :  { %17 = vsyncpa [#allocation15], 0 }
   0xd   :  { %19 = vsyncpa [#allocation15 + $0x1], 0  ;;  %s3361_s21 = smov 0   ;;  %s3363_s22 = smov 0  }
   0xe   :  { %s3365_s23 = smov 0   ;;  %s3367_s24 = smov 0  }
   0xf   :  { %s3369_s25 = smov 0   ;;  %s3371_s26 = smov 0  }
  0x10   :  { %s3373_s27 = smov 0   ;;  %s3375_s28 = smov 0  }
  0x11   :  { %s3377_s29 = smov 0   ;;  %s3379_s30 = smov 0  }
  0x12   :  { %s3381_s7 = smov 0  }
  0x13 LB: > { %4743 = sst [smem:[#allocation21_spill]] %s3098_s27  ;;  %s37_s8 = sadd.s32 1, %s3106_s29  ;;  %s3114_s7 = sphi %s3381_s7, %s25_s7   ;;  %s3110_s30 = sphi %s3379_s30, %s4856_s30   ;;  %s3106_s29 = sphi %s3377_s29, %s4855_s29   ;;  %s3102_s28 = sphi %s3375_s28, %s4848_s28   ;;  %s3098_s27 = sphi %s3373_s27, %s4847_s27   ;;  %s3094_s26 = sphi %s3371_s26, %s4854_s26   ;;  %s3090_s25 = sphi %s3369_s25, %s4853_s25   ;;  %s3086_s24 = sphi %s3367_s24, %s4852_s24   ;;  %s3082_s23 = sphi %s3365_s23, %s4851_s23   ;;  %s3078_s22 = sphi %s3363_s22, %s4850_s22   ;;  %s3074_s21 = sphi %s3361_s21, %s4849_s21  }
  0x14   : > { %4744 = sst [smem:[#allocation22_spill]] %s3106_s29  ;;  %s40_s9 = sadd.s32 1, %s3110_s30 }
  0x15   : > { %4745 = sst [smem:[#allocation23_spill]] %s3110_s30  ;;  %p38_p0 = scmp.ge.s32.totalorder %s37_s8, 2 }
  0x16   : > { %s74_s10 = ssub.s32 1, %s3110_s30  ;;  %s81_s12 = sadd.s32 1, %s3094_s26 }
  0x17   : > { %s75_s11 = smul.u32 %s3106_s29, %s74_s10  ;;  %s4858_s8 = smov (%p38_p0, %s37_s8), 0 }
  0x18   : > { %s4860_s9 = smov (!%p38_p0, %s40_s9), %s3110_s30  ;;  %p88_p1 = scmp.ne.s32.totalorder %s3094_s26, %s3090_s25 }
  0x19   : > { %p4722_p2 = scmp.eq.s32.totalorder %s3114_s7, 0  ;;  %p42_p3 = scmp.ge.s32.totalorder %s4860_s9, 2 }
  0x1a   : > { %p4714_p5 = scmp.lt.s32.totalorder %s3114_s7, 4  ;;  %s272_s15 = sand.u32 1, %s3114_s7  }
  0x1b   : > { %p3429_p4 = por %p4722_p2, %p88_p1  ;;  %s4862_s9 = smov (%p42_p3, %s4860_s9), 0 }
  0x1c   : > { %s76_s14 = ssub.s32 1, %s4862_s9  ;;  %s274_s17 = sand.u32 1, %s3094_s26  }
  0x1d   : > { %s77_s16 = smul.u32 %s76_s14, %s4858_s8  ;;  %s1831_s18 = sshll.u32 %s75_s11, 7 }
  0x1e   : > { %s1830_s20 = sshll.u32 %s274_s17, 7  ;;  %s4747_s1 = sld [smem:[#allocation37_spill]] }
  0x1f   : > { %s78_s19 = ssub.s32 %s75_s11, %s77_s16  ;;  %s276_s4 = scalar_lea.vmem [#allocation10], %s1830_s20 }
  0x20   : > { %p79_p6 = scmp.eq.s32.totalorder %s78_s19, 0  ;;  %s284_s2 = sshll.u32 %s276_s4, 4  ;;  %s3448_s2 = int_to_ptr.vmem [resolvable:$true] %s284_s2 }
  0x21   : > { %p3454_p7 = pnand %p4714_p5, %p3429_p4  ;;  %s3458_s6 = scalar_lea.sflag [#allocation11], %s272_s15 }
  0x22   : > { %s3446_s27 = scalar_select %p79_p6, %s3094_s26, %s81_s12  }
  0x23   : > { %p2672_p9 = pneg %p3454_p7 }
  0x24   : > { %s3443_s5 = scalar_lea.hbm %s4747_s1, %s1831_s18  ;;  %4748 = sst [smem:[#allocation24_spill]] %s3446_s27 }
  0x25   : > { %s2670_s14 = scalar_lea.hbm %s3443_s5, 2048  ;;  %s2675_s13 = scalar_lea.hbm %s4747_s1, 4096 }
  0x26   : > { %p2671_p8 = scmp.ne.s32.totalorder %s3443_s5, %s2670_s14  ;;  %p2676_p12 = scmp.lt.u32.totalorder %s3443_s5, %s4747_s1 }
  0x27   : > { %p2677_p13 = scmp.lt.u32.totalorder %s2675_s13, %s2670_s14  ;;  %p2679_p1 = scmp.lt.u32.totalorder %s2670_s14, %s3443_s5 }
  0x28   : > { %p2673_p10 = pnand %p2672_p9, %p2671_p8 }
  0x29   : > { %p2678_p0 = por %p2677_p13, %p2676_p12 }
  0x2a   : > { %p2674_p11 = pneg %p2673_p10 }
  0x2b   : > { %p2680_p3 = por %p2679_p1, %p2678_p0 }
  0x2d   : > { %p2681_p4 = pnand %p2680_p3, %p2674_p11 }
  0x2f   : > { %2684 = shalt.err (!%p2681_p4)
}
  0x30   : > { %s2685_s15 = scalar_lea.vmem %s3448_s2, 2048  ;;  %s3312_s18 = smov [#allocation10]  }
  0x31   : > { %p2686_p6 = scmp.ne.s32.totalorder %s3448_s2, %s2685_s15  ;;  %s2690_s19 = sshll.u32 %s3312_s18, 4  ;;  %s2691_s19 = int_to_ptr.vmem [resolvable:$false] %s2690_s19 }
  0x32   : > { %s2692_s20 = scalar_lea.vmem %s2691_s19, 4096  ;;  %p2693_p5 = scmp.lt.s32.totalorder %s3448_s2, %s2691_s19 }
  0x33   : > { %p2688_p8 = pnand %p2686_p6, %p2672_p9  ;;  %p2694_p12 = scmp.lt.s32.totalorder %s2692_s20, %s2685_s15 }
  0x35   : > { %p2689_p10 = pneg %p2688_p8  ;;  %p2695_p13 = por %p2694_p12, %p2693_p5 }
  0x37   : > { %p2696_p0 = pnand %p2695_p13, %p2689_p10 }
  0x39   : > { %2699 = shalt.err (!%p2696_p0)
}
  0x3a   : > { %s3313_s10 = smov 256   ;;  %s4715_s14 = smov 128  }
  0x3b   : > { %s4717_s4 = smov 8   ;;  %s3489_s12 = sadd.s32 4294967295, %s3114_s7  }
  0x3c   : > { %2163 = dma.hbm_to_vmem [thread:$0]  (!%p3454_p7), %s3443_s5, 2048, %s3448_s2, %s3458_s6, %s3313_s10, %s4715_s14, %s4717_s4  }
  0x3d   : > { %s1826_s13 = sadd.s32 4294967294, %s3114_s7   ;;  %p94_p5 = scmp.ne.s32.totalorder %s3090_s25, %s3086_s24 }
  0x3e   : > { %p4721_p9 = scmp.eq.s32.totalorder %s3489_s12, 0  ;;  %p152_p11 = scmp.ne.s32.totalorder %s3078_s22, %s3074_s21 }
  0x3f   : > { %p233_p3 = scmp.eq.s32.totalorder %s1826_s13, 3  ;;  %p1827_p6 = scmp.ge.s32.totalorder %s3114_s7, 1 }
  0x40   : > { %p3500_p7 = por %p4721_p9, %p94_p5  ;;  %p3506_p4 = por %p152_p11, %p4721_p9 }
  0x41   : > { %p3511_p8 = por %p233_p3, %p152_p11  ;;  %p240_p10 = scmp.lt.s32.totalorder %s3114_s7, 5 }
  0x42   : > { %s4750_s2 = scalar_select %p3500_p7, 1, 0 }
  0x43   : > { %s4751_s5 = scalar_select %p3506_p4, 1, 0 }
  0x44   : > { %s4752_s24 = scalar_select %p3511_p8, 1, 0 }
  0x45   : > { %p3516_p12 = pnand %p1827_p6, %p240_p10  ;;  %s3316_s16 = smov [#allocation7]  }
  0x46   : > { %s255_s17 = sshll.u32 %s3316_s16, 4  ;;  %s3526_s15 = smul.u32 %s3106_s29, %s3110_s30  ;;  %s3520_s17 = int_to_ptr.vmem [resolvable:$true] %s255_s17 }
  0x47   : > { %s4753_s11 = scalar_select %p3516_p12, 1, 0 }
  0x48   : > { %p2156_p13 = pneg %p3516_p12  ;;  %s139_s18 = sadd.s32 1, %s3082_s23 }
  0x49   : > { %s135_s20 = smul.u32 %s4862_s9, %s4858_s8  ;;  %s306_s10 = sand.u32 1, %s3082_s23  }
  0x4a   : > { %p3531_p0 = pnand %p2156_p13, %p4721_p9  ;;  %s4755_s0 = sld [smem:[#allocation36_spill]] }
  0x4b   : > { %s136_s13 = ssub.s32 %s3526_s15, %s135_s20 }
  0x4c   : > { %p2702_p3 = pneg %p3531_p0 }
  0x50   : > { %s2700_s4 = scalar_lea.hbm %s4755_s0, 2048 }
  0x51   : > { %p2701_p11 = scmp.ne.s32.totalorder %s4755_s0, %s2700_s4  ;;  %p2707_p13 = scmp.lt.u32.totalorder %s2700_s4, %s4755_s0 }
  0x53   : > { %p2703_p6 = pnand %p2702_p3, %p2701_p11 }
  0x55   : > { %p2704_p10 = pneg %p2703_p6 }
  0x57   : > { %p2709_p9 = pnand %p2707_p13, %p2704_p10 }
  0x59   : > { %2712 = shalt.err (!%p2709_p9)
}
  0x5a   : > { %s2713_s20 = scalar_lea.vmem %s3520_s17, 2048  ;;  %p2721_p8 = scmp.lt.s32.totalorder %s3520_s17, %s3520_s17 }
  0x5b   : > { %p2714_p1 = scmp.ne.s32.totalorder %s3520_s17, %s2713_s20  ;;  %p2722_p4 = scmp.lt.s32.totalorder %s2713_s20, %s2713_s20 }
  0x5d   : > { %p2716_p5 = pnand %p2714_p1, %p2702_p3  ;;  %p2723_p7 = por %p2722_p4, %p2721_p8 }
  0x5f   : > { %p2717_p2 = pneg %p2716_p5 }
  0x61   : > { %p2724_p12 = pnand %p2723_p7, %p2717_p2 }
  0x63   : > { %2727 = shalt.err (!%p2724_p12)
}
  0x64   : > { %s4756_s1 = smov 8   ;;  %s4757_s27 = smov 128  }
  0x65   : > { %2159 = dma.hbm_to_vmem [thread:$0]  (!%p3531_p0), %s4755_s0, 2048, %s3520_s17, [#allocation8], %s4757_s27, %s4757_s27, %s4756_s1  }
  0x66   : > { %p137_p2 = scmp.eq.s32.totalorder %s136_s13, 0  ;;  %p4758_p9 = scmp.eq.s32.totalorder %s3114_s7, 0 }
  0x67   : > { %p4759_p1 = scmp.ne.s32.totalorder %s3082_s23, %s3078_s22  ;;  %p4761_p8 = scmp.eq.s32.totalorder %s3489_s12, 3 }
  0x68   : > { %s1832_s4 = sshll.u32 %s306_s10, 7  ;;  %s1869_s16 = sshll.u32 %s3526_s15, 11 }
  0x69   : > { %p148_p7 = por %p4759_p1, %p4758_p9  ;;  %p4760_p4 = pmov %p4759_p1 }
  0x6a   : > { %s3580_s19 = scalar_select %p137_p2, %s3082_s23, %s139_s18  }
  0x6b   : > { %p3575_p12 = por %p4761_p8, %p4760_p4  ;;  %s4763_s3 = sld [smem:[#allocation39_spill]] }
  0x6c   : > { %s308_s17 = scalar_lea.vmem [#allocation12], %s1832_s4  ;;  %p4764_p0 = scmp.lt.s32.totalorder %s3114_s7, 4 }
  0x6d   : > { %s316_s13 = sshll.u32 %s308_s17, 4  ;;  %s3588_s13 = int_to_ptr.vmem [resolvable:$true] %s316_s13 }
  0x6e   : > { %p3592_p5 = pnand %p4764_p0, %p148_p7 }
  0x70   : > { %p2730_p3 = pneg %p3592_p5 }
  0x71   : > { %s3586_s30 = scalar_lea.hbm %s4763_s3, %s1869_s16  ;;  %s2733_s4 = scalar_lea.hbm %s4763_s3, 4096 }
  0x72   : > { %s2728_s15 = scalar_lea.hbm %s3586_s30, 2048  ;;  %p2734_p13 = scmp.lt.u32.totalorder %s3586_s30, %s4763_s3 }
  0x73   : > { %p2729_p11 = scmp.ne.s32.totalorder %s3586_s30, %s2728_s15  ;;  %p2735_p2 = scmp.lt.u32.totalorder %s2733_s4, %s2728_s15 }
  0x74   : > { %p2737_p1 = scmp.lt.u32.totalorder %s2728_s15, %s3586_s30 }
  0x75   : > { %p2731_p6 = pnand %p2730_p3, %p2729_p11  ;;  %p2736_p9 = por %p2735_p2, %p2734_p13 }
  0x77   : > { %p2732_p10 = pneg %p2731_p6  ;;  %p2738_p7 = por %p2737_p1, %p2736_p9 }
  0x79   : > { %p2739_p4 = pnand %p2738_p7, %p2732_p10 }
  0x7b   : > { %2742 = shalt.err (!%p2739_p4)
}
  0x7c   : > { %s2743_s29 = scalar_lea.vmem %s3588_s13, 2048  ;;  %s3317_s17 = smov [#allocation12]  }
  0x7d   : > { %p2744_p8 = scmp.ne.s32.totalorder %s3588_s13, %s2743_s29  ;;  %s2748_s18 = sshll.u32 %s3317_s17, 4  ;;  %s2749_s18 = int_to_ptr.vmem [resolvable:$false] %s2748_s18 }
  0x7e   : > { %s2750_s10 = scalar_lea.vmem %s2749_s18, 4096  ;;  %p2751_p6 = scmp.lt.s32.totalorder %s3588_s13, %s2749_s18 }
  0x7f   : > { %p2746_p0 = pnand %p2744_p8, %p2730_p3  ;;  %p2752_p13 = scmp.lt.s32.totalorder %s2750_s10, %s2743_s29 }
  0x81   : > { %p2747_p11 = pneg %p2746_p0  ;;  %p2753_p2 = por %p2752_p13, %p2751_p6 }
  0x83   : > { %p2754_p9 = pnand %p2753_p2, %p2747_p11 }
  0x85   : > { %2757 = shalt.err (!%p2754_p9)
}
  0x86   : > { %2166 = dma.hbm_to_vmem [thread:$0]  (!%p3592_p5), %s3586_s30, 2048, %s3588_s13, %s3458_s6, %s4757_s27, %s4757_s27, %s4756_s1  }
  0x87   : > { %p4766_p3 = scmp.ne.s32.totalorder %s4753_s11, 0 }
  0x88   : > { %p4767_p10 = scmp.eq.s32.totalorder (!%p4766_p3), %s3489_s12, 0 }
  0x89   : > { %328 = sbr.rel (%p4766_p3) target bundleno = 1317 (0x525), region = 40 }
  0x90   : > { %3053 = dma.done.wait (%p4767_p10), [#allocation8], 2048   ;;  %p4768_p1 = pmov %p4767_p10 }
  0x91   : > { %s334_s0 = sand.u32 1, %s3489_s12   ;;  %s336_s15 = sand.u32 1, %s3090_s25  }
  0x92   : > { %3055 = vsyncadd (%p4768_p1), [#allocation8], 4294965248  ;;  %s1837_s4 = sshll.u32 %s336_s15, 7  ;;  %s335_s16 = scalar_lea.sflag [#allocation11], %s334_s0 }
  0x93   : > { %s3633_s20 = scalar_lea.vmem [#allocation10], %s1837_s4  ;;  %p4769_p7 = scmp.ne.s32.totalorder %s4750_s2, 0 }
  0x95   : > { %3057 = dma.done.wait (%p4769_p7), %s335_s16, 2048  }
  0x96   : > { %3059 = vsyncadd (%p4769_p7), %s335_s16, 4294965248  ;;  %s345_s6 = sand.u32 1, %s3078_s22   ;;  %p4770_p5 = scmp.ne.s32.totalorder %s4751_s5, 0 }
  0x97   : > { %s1838_s11 = sshll.u32 %s345_s6, 7 }
  0x98   : > { %s3642_s1 = scalar_lea.vmem [#allocation12], %s1838_s11 }
  0x99   : > { %3061 = dma.done.wait (%p4770_p5), %s335_s16, 2048  }
  0x9a   : > { %3063 = vsyncadd (%p4770_p5), %s335_s16, 4294965248  ;;  %s4771_s27 = sld [smem:[#allocation21_spill]]  ;;  %s389_s2 = ssub.s32 1, %s3102_s28 }
  0x9b   : > { %p401_p4 = scmp.eq.s32.totalorder %s3102_s28, 0  ;;  %s4772_s29 = sld [smem:[#allocation38_spill]] }
  0x9c   : > { %s3662_s18 = scalar_lea.vmem [#allocation14], %s1838_s11 }
  0xa0   : > { %s390_s30 = smul.u32 %s4771_s27, %s389_s2  ;;  %p402_p8 = scmp.eq.s32.totalorder %s4771_s27, 0 }
  0xa2   : > { %p391_p0 = scmp.lt.s32.totalorder %s390_s30, 1  ;;  %p403_p11 = pnand %p402_p8, %p401_p4 }
  0xa3   : > { %v407_v0 = vld [vmem:[#allocation7] sm:$0xff] (!%p403_p11)  ;;  %s4773_s15 = sld [smem:[#allocation40_spill]] (!%p403_p11)  ;;  %v408_v2 = vld [vmem:[#allocation7 + $0x8] sm:$0xff] (!%p403_p11)  ;;  %v409_v5 = vld [vmem:[#allocation7 + $0x10] sm:$0xff] (!%p403_p11)  ;;  %v3318_v8 = vmov (!%p403_p11), -inf  }
  0xa4   : > { %s4864_s30 = smov (!%p391_p0, %s390_s30), 1  ;;  %406 = sbr.rel (%p403_p11) target bundleno = 181 (0xb5), region = 56 }
  0xa5   : > { %s393_s17 = scalar_lea.vmem %s4772_s29, %s4864_s30  ;;  %v410_v6 = vld [vmem:[#allocation7 + $0x18] sm:$0xff] (!%p403_p11)  ;;  %v411_v7 = vld [vmem:[#allocation7 + $0x20] sm:$0xff] (!%p403_p11)  ;;  %462 = vst [vmem:[#allocation3] sm:$0xff] (!%p403_p11), %v3318_v8  ;;  %463 = vst [vmem:[#allocation3 + $0x8] sm:$0xff] (!%p403_p11), %v3318_v8 }
  0xa6   : > { %464 = vst [vmem:[#allocation3 + $0x10] sm:$0xff] (!%p403_p11), %v3318_v8  ;;  %465 = vst [vmem:[#allocation3 + $0x18] sm:$0xff] (!%p403_p11), %v3318_v8  ;;  %v412_v12 = vld [vmem:[#allocation7 + $0x28] sm:$0xff] (!%p403_p11)  ;;  %v413_v13 = vld [vmem:[#allocation7 + $0x30] sm:$0xff] (!%p403_p11) }
  0xa7   : > { %466 = vst [vmem:[#allocation3 + $0x20] sm:$0xff] (!%p403_p11), %v3318_v8  ;;  %467 = vst [vmem:[#allocation3 + $0x28] sm:$0xff] (!%p403_p11), %v3318_v8  ;;  %v414_v14 = vld [vmem:[#allocation7 + $0x38] sm:$0xff] (!%p403_p11)  ;;  %v415_v18 = vld [vmem:[#allocation7 + $0x40] sm:$0xff] (!%p403_p11) }
  0xa8   : > { %468 = vst [vmem:[#allocation3 + $0x30] sm:$0xff] (!%p403_p11), %v3318_v8  ;;  %469 = vst [vmem:[#allocation3 + $0x38] sm:$0xff] (!%p403_p11), %v3318_v8  ;;  %v416_v19 = vld [vmem:[#allocation7 + $0x48] sm:$0xff] (!%p403_p11)  ;;  %v417_v20 = vld [vmem:[#allocation7 + $0x50] sm:$0xff] (!%p403_p11) }
  0xa9   : > { %v3667_v1 = vld [vmem:[%s4773_s15] ss:$0 sm:$0xff] (!%p403_p11)  ;;  %470 = vst [vmem:[#allocation3 + $0x40] sm:$0xff] (!%p403_p11), %v3318_v8  ;;  %471 = vst [vmem:[#allocation3 + $0x48] sm:$0xff] (!%p403_p11), %v3318_v8  ;;  %v418_v24 = vld [vmem:[#allocation7 + $0x58] sm:$0xff] (!%p403_p11) }
  0xaa   : > { %v430_v3 = vsub.f32 (!%p403_p11), %v407_v0, %v3667_v1  ;;  %v431_v4 = vsub.f32 (!%p403_p11), %v408_v2, %v3667_v1  ;;  %472 = vst [vmem:[#allocation3 + $0x50] sm:$0xff] (!%p403_p11), %v3318_v8  ;;  %473 = vst [vmem:[#allocation3 + $0x58] sm:$0xff] (!%p403_p11), %v3318_v8  ;;  %v432_v9 = vsub.f32 (!%p403_p11), %v409_v5, %v3667_v1  ;;  %v419_v25 = vld [vmem:[#allocation7 + $0x60] sm:$0xff] (!%p403_p11)  ;;  %v420_v26 = vld [vmem:[#allocation7 + $0x68] sm:$0xff] (!%p403_p11) }
  0xab   : > { %474 = vst [vmem:[#allocation3 + $0x60] sm:$0xff] %v3318_v8  ;;  %475 = vst [vmem:[#allocation3 + $0x68] sm:$0xff] %v3318_v8  ;;  %v433_v10 = vsub.f32 %v410_v6, %v3667_v1  ;;  %v434_v11 = vsub.f32 %v411_v7, %v3667_v1  ;;  %v435_v15 = vsub.f32 %v412_v12, %v3667_v1  ;;  %v421_v30 = vld [vmem:[#allocation7 + $0x70] sm:$0xff]  ;;  %v422_v31 = vld [vmem:[#allocation7 + $0x78] sm:$0xff] }
  0xac   : > { %476 = vst [vmem:[#allocation3 + $0x70] sm:$0xff] %v3318_v8  ;;  %477 = vst [vmem:[#allocation3 + $0x78] sm:$0xff] %v3318_v8  ;;  %v436_v16 = vsub.f32 %v413_v13, %v3667_v1  ;;  %v437_v17 = vsub.f32 %v414_v14, %v3667_v1  ;;  %v438_v21 = vsub.f32 %v415_v18, %v3667_v1 }
  0xad   : > { %446 = vst [vmem:[#allocation6] sm:$0xff] %v430_v3  ;;  %447 = vst [vmem:[#allocation6 + $0x8] sm:$0xff] %v431_v4  ;;  %v439_v22 = vsub.f32 %v416_v19, %v3667_v1  ;;  %v440_v23 = vsub.f32 %v417_v20, %v3667_v1  ;;  %v441_v27 = vsub.f32 %v418_v24, %v3667_v1 }
  0xae   : > { %448 = vst [vmem:[#allocation6 + $0x10] sm:$0xff] %v432_v9  ;;  %449 = vst [vmem:[#allocation6 + $0x18] sm:$0xff] %v433_v10  ;;  %v442_v28 = vsub.f32 %v419_v25, %v3667_v1  ;;  %v443_v29 = vsub.f32 %v420_v26, %v3667_v1  ;;  %v444_v32 = vsub.f32 %v421_v30, %v3667_v1 }
  0xaf   : > { %450 = vst [vmem:[#allocation6 + $0x20] sm:$0xff] %v434_v11  ;;  %451 = vst [vmem:[#allocation6 + $0x28] sm:$0xff] %v435_v15  ;;  %v445_v33 = vsub.f32 %v422_v31, %v3667_v1 }
  0xb0   : > { %452 = vst [vmem:[#allocation6 + $0x30] sm:$0xff] %v436_v16  ;;  %453 = vst [vmem:[#allocation6 + $0x38] sm:$0xff] %v437_v17 }
  0xb1   : > { %454 = vst [vmem:[#allocation6 + $0x40] sm:$0xff] %v438_v21  ;;  %455 = vst [vmem:[#allocation6 + $0x48] sm:$0xff] %v439_v22 }
  0xb2   : > { %456 = vst [vmem:[#allocation6 + $0x50] sm:$0xff] %v440_v23  ;;  %457 = vst [vmem:[#allocation6 + $0x58] sm:$0xff] %v441_v27 }
  0xb3   : > { %458 = vst [vmem:[#allocation6 + $0x60] sm:$0xff] %v442_v28  ;;  %459 = vst [vmem:[#allocation6 + $0x68] sm:$0xff] %v443_v29 }
  0xb4   : > { %460 = vst [vmem:[#allocation6 + $0x70] sm:$0xff] %v444_v32  ;;  %461 = vst [vmem:[#allocation6 + $0x78] sm:$0xff] %v445_v33 }
  0xb5 PF: > { %p1841_p6 = scmp.ne.s32.totalorder %s3102_s28, 0 }
  0xb7   : > { %480 = sbr.rel (%p1841_p6) target bundleno = 664 (0x298), region = 60 }
  0xbe   : > { %v497_v34 = vld [vmem:[%s3633_s20] sm:$0xff]  ;;  %v498_v35 = vld [vmem:[%s3633_s20 + $0x8] sm:$0xff]  ;;  %v499_v36 = vld [vmem:[%s3633_s20 + $0x10] sm:$0xff]  ;;  %v715_v10 = vlaneseq  ;;  %s4774_s4 = sld [smem:[#allocation21_spill]]  ;;  %s3945_s30 = smov 0  }
  0xbf   : > { %v2046_v37 = vpack.c.bf16 %v498_v35, %v497_v34  ;;  %v500_v38 = vld [vmem:[%s3633_s20 + $0x18] sm:$0xff]  ;;  %v501_v40 = vld [vmem:[%s3633_s20 + $0x20] sm:$0xff]  ;;  %v502_v41 = vld [vmem:[%s3633_s20 + $0x28] sm:$0xff] }
  0xc0   : > { %v2050_v39 = vpack.c.bf16 %v500_v38, %v499_v36  ;;  %v2054_v42 = vpack.c.bf16 %v502_v41, %v501_v40  ;;  %v481_v43 = vld [vmem:[#allocation6] sm:$0xff]  ;;  %v503_v45 = vld [vmem:[%s3633_s20 + $0x30] sm:$0xff]  ;;  %v504_v46 = vld [vmem:[%s3633_s20 + $0x38] sm:$0xff]  ;;  %v3708_v14 = vand.u32 127, %v715_v10 }
  0xc1   : > { %2047 = vmatprep.subr.bf16.mxu0 %v2046_v37  ;;  %2110 = vmatprep.subr.bf16.mxu1 %v2046_v37  ;;  %v489_v44 = vld [vmem:[#allocation6 + $0x40] sm:$0xff]  ;;  %v2058_v47 = vpack.c.bf16 %v504_v46, %v503_v45  ;;  %v506_v49 = vld [vmem:[%s3633_s20 + $0x48] sm:$0xff]  ;;  %v507_v51 = vld [vmem:[%s3633_s20 + $0x50] sm:$0xff] }
  0xc2   : > { %2049 = vmatpush3.bf16.msra.mxu0 %v2046_v37  ;;  %2118 = vmatpush3.bf16.msra.mxu1 %v2046_v37  ;;  %v505_v48 = vld [vmem:[%s3633_s20 + $0x40] sm:$0xff]  ;;  %v508_v52 = vld [vmem:[%s3633_s20 + $0x58] sm:$0xff]  ;;  %v510_v55 = vld [vmem:[%s3633_s20 + $0x68] sm:$0xff]  ;;  %4775 = vst [vmem:[#allocation25_spill] sm:$0xff] %v3708_v14 }
  0xc3   : > { %2051 = vmatprep.subr.bf16.mxu0 %v2050_v39  ;;  %2111 = vmatprep.subr.bf16.mxu1 %v2050_v39  ;;  %v2062_v50 = vpack.c.bf16 %v506_v49, %v505_v48  ;;  %v2066_v53 = vpack.c.bf16 %v508_v52, %v507_v51  ;;  %v509_v54 = vld [vmem:[%s3633_s20 + $0x60] sm:$0xff]  ;;  %v511_v57 = vld [vmem:[%s3633_s20 + $0x70] sm:$0xff]  ;;  %v512_v58 = vld [vmem:[%s3633_s20 + $0x78] sm:$0xff] }
  0xc4   : > { %1966 = vmatprep.mubr.f32.mxu0 %v481_v43  ;;  %1978 = vmatprep.mubr.f32.mxu1 %v489_v44  ;;  %v2070_v56 = vpack.c.bf16 %v510_v55, %v509_v54  ;;  %v2074_v59 = vpack.c.bf16 %v512_v58, %v511_v57  ;;  %v482_v60 = vld [vmem:[#allocation6 + $0x8] sm:$0xff]  ;;  %v483_v62 = vld [vmem:[#allocation6 + $0x10] sm:$0xff]  ;;  %v484_v0 = vld [vmem:[#allocation6 + $0x18] sm:$0xff]  ;;  %s1843_s27 = sshll.u32 %s4774_s4, 7 }
  0xc5   : > { %v490_v61 = vld [vmem:[#allocation6 + $0x48] sm:$0xff]  ;;  %v491_v63 = vld [vmem:[#allocation6 + $0x50] sm:$0xff]  ;;  %v492_v1 = vld [vmem:[#allocation6 + $0x58] sm:$0xff]  ;;  %s3754_s2 = scalar_lea.vmem [#allocation2], %s1843_s27 }
  0xc6   : > { %2053 = vmatpush3.bf16.msra.mxu0 %v2050_v39  ;;  %2119 = vmatpush3.bf16.msra.mxu1 %v2050_v39  ;;  %v485_v2 = vld [vmem:[#allocation6 + $0x20] sm:$0xff]  ;;  %v486_v4 = vld [vmem:[#allocation6 + $0x28] sm:$0xff]  ;;  %v487_v6 = vld [vmem:[#allocation6 + $0x30] sm:$0xff] }
  0xc7   : > { %2055 = vmatprep.subr.bf16.mxu0 %v2054_v42  ;;  %2112 = vmatprep.subr.bf16.mxu1 %v2054_v42  ;;  %v493_v3 = vld [vmem:[#allocation6 + $0x60] sm:$0xff]  ;;  %v494_v5 = vld [vmem:[#allocation6 + $0x68] sm:$0xff]  ;;  %v495_v7 = vld [vmem:[#allocation6 + $0x70] sm:$0xff] }
  0xc8   : > { %v488_v8 = vld [vmem:[#allocation6 + $0x38] sm:$0xff]  ;;  %v3702_v11 = vld [vmem:[#allocation3] sm:$0xff]   ;;  %v3704_v12 = vld [vmem:[#allocation3 + $0x8] sm:$0xff]  }
  0xc9   : > { %v496_v9 = vld [vmem:[#allocation6 + $0x78] sm:$0xff]  ;;  %v3706_v13 = vld [vmem:[#allocation3 + $0x10] sm:$0xff]   ;;  %v3712_v16 = vld [vmem:[#allocation3 + $0x20] sm:$0xff]  }
  0xca   : > { %2057 = vmatpush3.bf16.msra.mxu0 %v2054_v42  ;;  %2120 = vmatpush3.bf16.msra.mxu1 %v2054_v42  ;;  %v3710_v15 = vld [vmem:[#allocation3 + $0x18] sm:$0xff]   ;;  %v3714_v17 = vld [vmem:[#allocation3 + $0x28] sm:$0xff]   ;;  %v3716_v18 = vld [vmem:[#allocation3 + $0x30] sm:$0xff]  }
  0xcb   : > { %2059 = vmatprep.subr.bf16.mxu0 %v2058_v47  ;;  %2113 = vmatprep.subr.bf16.mxu1 %v2058_v47  ;;  %v3718_v19 = vld [vmem:[#allocation3 + $0x38] sm:$0xff]   ;;  %v3720_v20 = vld [vmem:[#allocation3 + $0x40] sm:$0xff]   ;;  %v3722_v21 = vld [vmem:[#allocation3 + $0x48] sm:$0xff]  }
  0xcc   : > { %v3724_v22 = vld [vmem:[#allocation3 + $0x50] sm:$0xff]   ;;  %v3726_v23 = vld [vmem:[#allocation3 + $0x58] sm:$0xff]   ;;  %v3728_v24 = vld [vmem:[#allocation3 + $0x60] sm:$0xff]  }
  0xcd   : > { %v3730_v25 = vld [vmem:[#allocation3 + $0x68] sm:$0xff]   ;;  %v3732_v26 = vld [vmem:[#allocation3 + $0x70] sm:$0xff]   ;;  %v3734_v27 = vld [vmem:[#allocation3 + $0x78] sm:$0xff]  }
  0xce   : > { %2061 = vmatpush3.bf16.msra.mxu0 %v2058_v47  ;;  %2121 = vmatpush3.bf16.msra.mxu1 %v2058_v47  ;;  %v1842_v28 = vld [vmem:[%s393_s17] ss:$0 sm:$0xff] }
  0xcf   : > { %2063 = vmatprep.subr.bf16.mxu0 %v2062_v50  ;;  %2114 = vmatprep.subr.bf16.mxu1 %v2062_v50 }
  0xd2   : > { %2065 = vmatpush3.bf16.msra.mxu0 %v2062_v50  ;;  %2122 = vmatpush3.bf16.msra.mxu1 %v2062_v50 }
  0xd3   : > { %2067 = vmatprep.subr.bf16.mxu0 %v2066_v53  ;;  %2115 = vmatprep.subr.bf16.mxu1 %v2066_v53 }
  0xd6   : > { %2069 = vmatpush3.bf16.msra.mxu0 %v2066_v53  ;;  %2123 = vmatpush3.bf16.msra.mxu1 %v2066_v53 }
  0xd7   : > { %2071 = vmatprep.subr.bf16.mxu0 %v2070_v56  ;;  %2116 = vmatprep.subr.bf16.mxu1 %v2070_v56 }
  0xda   : > { %2073 = vmatpush3.bf16.msra.mxu0 %v2070_v56  ;;  %2124 = vmatpush3.bf16.msra.mxu1 %v2070_v56 }
  0xdb   : > { %2075 = vmatprep.subr.bf16.mxu0 %v2074_v59  ;;  %2117 = vmatprep.subr.bf16.mxu1 %v2074_v59 }
  0xde   : > { %2077 = vmatpush3.bf16.msra.mxu0 %v2074_v59  ;;  %2125 = vmatpush3.bf16.msra.mxu1 %v2074_v59 }
  0xe1   : > { %1967 = vmatmul.mubr.f32.vlgmr.msra.gmra.mrb[0].mxu0 %v482_v60  ;;  %1979 = vmatmul.mubr.f32.vlgmr.msra.gmra.mrb[0].mxu1 %v490_v61 }
  0xe2   : > { %1969 = vmatprep.mubr.f32.mxu0 %v483_v62  ;;  %1981 = vmatprep.mubr.f32.mxu1 %v491_v63 }
  0xe5   : > { %1970 = vmatmul.mubr.f32.gmra.mrb[2].mxu0 %v484_v0  ;;  %1982 = vmatmul.mubr.f32.gmra.mrb[2].mxu1 %v492_v1 }
  0xe6   : > { %1972 = vmatprep.mubr.f32.mxu0 %v485_v2  ;;  %1984 = vmatprep.mubr.f32.mxu1 %v493_v3 }
  0xe9   : > { %1973 = vmatmul.mubr.f32.gmra.mrb[4].mxu0 %v486_v4  ;;  %1985 = vmatmul.mubr.f32.gmra.mrb[4].mxu1 %v494_v5 }
  0xea   : > { %1975 = vmatprep.mubr.f32.mxu0 %v487_v6  ;;  %1987 = vmatprep.mubr.f32.mxu1 %v495_v7 }
  0xed   : > { %1976 = vmatmul.mubr.f32.gmra.mrb[6].mxu0 %v488_v8  ;;  %1988 = vmatmul.mubr.f32.gmra.mrb[6].mxu1 %v496_v9 }
 0x1b4   : > { %v1968_v29 = vpop.f32.mrb[0].mxu0  ;;  %v1980_v30 = vpop.f32.mrb[0].mxu1 }
 0x1b5   : > { %v3742_v31 = vadd.f32 %v1968_v29, %v1842_v28  ;;  %v3744_v32 = vadd.f32 %v1980_v30, %v1842_v28  ;;  %v586_v33 = vpop.f32.mrb[1].mxu0  ;;  %v626_v34 = vpop.f32.mrb[1].mxu1 }
 0x1b6   : > { %v3746_v35 = vadd.f32 %v1842_v28, %v586_v33  ;;  %v3748_v36 = vadd.f32 %v1842_v28, %v626_v34  ;;  %v3813_v33 = vmov -inf   ;;  %v3815_v34 = vmov -inf  }
 0x1b7   : > { %v666_v37 = vmax.f32 %v3742_v31, 0.0   ;;  %v674_v38 = vmax.f32 %v3744_v32, 0.0  }
 0x1b8   : > { %v665_v39 = vmax.f32 %v3746_v35, 0.0   ;;  %v673_v40 = vmax.f32 %v3748_v36, 0.0   ;;  %v1971_v41 = vpop.f32.mrb[2].mxu0  ;;  %v1983_v42 = vpop.f32.mrb[2].mxu1 }
 0x1b9   : > { %684 = vst [vmem:[%s3754_s2 + $0x8] sm:$0xff] %v666_v37  ;;  %692 = vst [vmem:[%s3754_s2 + $0x48] sm:$0xff] %v674_v38  ;;  %v3762_v43 = vadd.f32 %v1971_v41, %v1842_v28  ;;  %v3764_v44 = vadd.f32 %v1983_v42, %v1842_v28  ;;  %v596_v45 = vpop.f32.mrb[3].mxu0  ;;  %v636_v46 = vpop.f32.mrb[3].mxu1  ;;  %v3817_v41 = vmov -inf   ;;  %v3819_v42 = vmov -inf  }
 0x1ba   : > { %683 = vst [vmem:[%s3754_s2] sm:$0xff] %v665_v39  ;;  %691 = vst [vmem:[%s3754_s2 + $0x40] sm:$0xff] %v673_v40  ;;  %v3772_v47 = vadd.f32 %v1842_v28, %v596_v45  ;;  %v3774_v48 = vadd.f32 %v1842_v28, %v636_v46  ;;  %v3821_v45 = vmov -inf   ;;  %v3823_v46 = vmov -inf  }
 0x1bb   : > { %v668_v49 = vmax.f32 %v3762_v43, 0.0   ;;  %v676_v50 = vmax.f32 %v3764_v44, 0.0  }
 0x1bc   : > { %v667_v51 = vmax.f32 %v3772_v47, 0.0   ;;  %v675_v52 = vmax.f32 %v3774_v48, 0.0   ;;  %v1974_v53 = vpop.f32.mrb[4].mxu0  ;;  %v1986_v54 = vpop.f32.mrb[4].mxu1 }
 0x1bd   : > { %686 = vst [vmem:[%s3754_s2 + $0x18] sm:$0xff] %v668_v49  ;;  %694 = vst [vmem:[%s3754_s2 + $0x58] sm:$0xff] %v676_v50  ;;  %v3786_v55 = vadd.f32 %v1974_v53, %v1842_v28  ;;  %v3788_v56 = vadd.f32 %v1986_v54, %v1842_v28  ;;  %v606_v57 = vpop.f32.mrb[5].mxu0  ;;  %v646_v58 = vpop.f32.mrb[5].mxu1  ;;  %v3827_v53 = vmov -inf   ;;  %v3829_v54 = vmov -inf  }
 0x1be   : > { %685 = vst [vmem:[%s3754_s2 + $0x10] sm:$0xff] %v667_v51  ;;  %693 = vst [vmem:[%s3754_s2 + $0x50] sm:$0xff] %v675_v52  ;;  %v3796_v59 = vadd.f32 %v1842_v28, %v606_v57  ;;  %v647_v60 = vadd.f32 %v1842_v28, %v646_v58  ;;  %v3833_v57 = vmov -inf   ;;  %v3835_v58 = vmov -inf  }
 0x1bf   : > { %v670_v61 = vmax.f32 %v3786_v55, 0.0   ;;  %v678_v62 = vmax.f32 %v3788_v56, 0.0   ;;  %v3831_v56 = vmov -inf  }
 0x1c0   : > { %v669_v63 = vmax.f32 %v3796_v59, 0.0   ;;  %v677_v0 = vmax.f32 %v647_v60, 0.0   ;;  %v1977_v1 = vpop.f32.mrb[6].mxu0  ;;  %v1989_v2 = vpop.f32.mrb[6].mxu1  ;;  %v3837_v60 = vmov -inf  }
 0x1c1   : > { %688 = vst [vmem:[%s3754_s2 + $0x28] sm:$0xff] %v670_v61  ;;  %696 = vst [vmem:[%s3754_s2 + $0x68] sm:$0xff] %v678_v62  ;;  %v622_v3 = vadd.f32 %v1977_v1, %v1842_v28  ;;  %v662_v4 = vadd.f32 %v1989_v2, %v1842_v28  ;;  %v616_v5 = vpop.f32.mrb[7].mxu0  ;;  %v656_v6 = vpop.f32.mrb[7].mxu1  ;;  %v3839_v1 = vmov -inf   ;;  %v3841_v2 = vmov -inf  }
 0x1c2   : > { %687 = vst [vmem:[%s3754_s2 + $0x20] sm:$0xff] %v669_v63  ;;  %695 = vst [vmem:[%s3754_s2 + $0x60] sm:$0xff] %v677_v0  ;;  %v617_v7 = vadd.f32 %v1842_v28, %v616_v5  ;;  %v657_v8 = vadd.f32 %v1842_v28, %v656_v6  ;;  %v3825_v28 = vmov -inf  }
 0x1c3   : > { %v672_v9 = vmax.f32 %v622_v3, 0.0   ;;  %v680_v10 = vmax.f32 %v662_v4, 0.0   ;;  %v3843_v3 = vmov -inf  }
 0x1c4   : > { %v671_v29 = vmax.f32 %v617_v7, 0.0   ;;  %v679_v30 = vmax.f32 %v657_v8, 0.0  }
 0x1c5   : > { %690 = vst [vmem:[%s3754_s2 + $0x38] sm:$0xff] %v672_v9  ;;  %698 = vst [vmem:[%s3754_s2 + $0x78] sm:$0xff] %v680_v10 }
 0x1c6   : > { %689 = vst [vmem:[%s3754_s2 + $0x30] sm:$0xff] %v671_v29  ;;  %697 = vst [vmem:[%s3754_s2 + $0x70] sm:$0xff] %v679_v30 }
 0x1c7 LB: >> { %4777 = vst [vmem:[#allocation26_spill] sm:$0xff] %v3118_v33  ;;  %4778 = vst [vmem:[#allocation27_spill] sm:$0xff] %v3122_v34  ;;  %771 = vmax.xlane.f32.xlu0 %v3306_v39  ;;  %775 = vmax.xlane.f32.xlu1 %v3298_v51  ;;  %v4785_v14 = vld [vmem:[#allocation25_spill] sm:$0xff]  ;;  %s722_s13 = sadd.s32 1, %s3310_s30   ;;  %s3310_s30 = sphi %s3945_s30, %s4829_s30   ;;  %v3306_v39 = vphi %v665_v39, %v4156_v39   ;;  %v3302_v37 = vphi %v666_v37, %v4164_v37   ;;  %v3298_v51 = vphi %v667_v51, %v4182_v51   ;;  %v3294_v49 = vphi %v668_v49, %v4190_v49   ;;  %v3290_v63 = vphi %v669_v63, %v4208_v63   ;;  %v3286_v61 = vphi %v670_v61, %v4216_v61   ;;  %v3282_v29 = vphi %v671_v29, %v4234_v29   ;;  %v3278_v9 = vphi %v672_v9, %v4242_v9   ;;  %v3274_v40 = vphi %v673_v40, %v4262_v40   ;;  %v3270_v38 = vphi %v674_v38, %v4270_v38   ;;  %v3266_v52 = vphi %v675_v52, %v4290_v52   ;;  %v3262_v50 = vphi %v676_v50, %v4296_v50   ;;  %v3258_v0 = vphi %v677_v0, %v897_v0   ;;  %v3254_v62 = vphi %v678_v62, %v898_v62   ;;  %v3250_v30 = vphi %v679_v30, %v899_v30   ;;  %v3246_v10 = vphi %v680_v10, %v900_v10   ;;  %v3242_v11 = vphi %v3702_v11, %v4159_v11   ;;  %v3238_v12 = vphi %v3704_v12, %v4167_v12   ;;  %v3234_v13 = vphi %v3706_v13, %v4185_v13   ;;  %v3230_v15 = vphi %v3710_v15, %v4193_v15   ;;  %v3226_v16 = vphi %v3712_v16, %v4211_v16   ;;  %v3222_v17 = vphi %v3714_v17, %v4219_v17   ;;  %v3218_v18 = vphi %v3716_v18, %v4237_v18   ;;  %v3214_v19 = vphi %v3718_v19, %v4245_v19   ;;  %v3210_v20 = vphi %v3720_v20, %v4265_v20   ;;  %v3206_v21 = vphi %v3722_v21, %v4273_v21   ;;  %v3202_v22 = vphi %v3724_v22, %v927_v22   ;;  %v3198_v23 = vphi %v3726_v23, %v928_v23   ;;  %v3194_v24 = vphi %v3728_v24, %v929_v24   ;;  %v3190_v25 = vphi %v3730_v25, %v930_v25   ;;  %v3186_v26 = vphi %v3732_v26, %v931_v26   ;;  %v3182_v27 = vphi %v3734_v27, %v932_v27   ;;  %v3178_v3 = vphi %v3843_v3, %v4828_v3   ;;  %v3174_v2 = vphi %v3841_v2, %v4827_v2   ;;  %v3170_v1 = vphi %v3839_v1, %v4826_v1   ;;  %v3166_v60 = vphi %v3837_v60, %v4825_v60   ;;  %v3162_v58 = vphi %v3835_v58, %v4824_v58   ;;  %v3158_v57 = vphi %v3833_v57, %v4823_v57   ;;  %v3154_v56 = vphi %v3831_v56, %v4822_v56   ;;  %v3150_v54 = vphi %v3829_v54, %v4821_v54   ;;  %v3146_v53 = vphi %v3827_v53, %v4820_v53   ;;  %v3142_v28 = vphi %v3825_v28, %v4819_v28   ;;  %v3138_v46 = vphi %v3823_v46, %v4818_v46   ;;  %v3134_v45 = vphi %v3821_v45, %v4817_v45   ;;  %v3130_v42 = vphi %v3819_v42, %v4816_v42   ;;  %v3126_v41 = vphi %v3817_v41, %v4815_v41   ;;  %v3122_v34 = vphi %v3815_v34, %v4814_v34   ;;  %v3118_v33 = vphi %v3813_v33, %v4813_v33  }
 0x1c8   : >> { %4779 = vst [vmem:[#allocation28_spill] sm:$0xff] %v3182_v27  ;;  %4780 = vst [vmem:[#allocation29_spill] sm:$0xff] %v3186_v26  ;;  %p4342_p13 = scmp.ge.s32.totalorder %s722_s13, 4  }
 0x1c9   : >> { %4781 = vst [vmem:[#allocation30_spill] sm:$0xff] %v3190_v25  ;;  %4782 = vst [vmem:[#allocation31_spill] sm:$0xff] %v3246_v10 }
 0x1ca   : >> { %4783 = vst [vmem:[#allocation32_spill] sm:$0xff] %v3250_v30 }
 0x1cb   : >> { %773 = vmax.xlane.f32.xlu0 %v3302_v37  ;;  %777 = vmax.xlane.f32.xlu1 %v3294_v49 }
 0x1cf   : >> { %779 = vmax.xlane.f32.xlu0 %v3290_v63  ;;  %781 = vmax.xlane.f32.xlu1 %v3286_v61 }
 0x1d3   : >> { %783 = vmax.xlane.f32.xlu0 %v3282_v29  ;;  %785 = vmax.xlane.f32.xlu1 %v3278_v9 }
 0x1d7   : >> { %787 = vmax.xlane.f32.xlu0 %v3274_v40  ;;  %789 = vmax.xlane.f32.xlu1 %v3270_v38 }
 0x1db   : >> { %791 = vmax.xlane.f32.xlu0 %v3266_v52  ;;  %793 = vmax.xlane.f32.xlu1 %v3262_v50 }
 0x1df   : >> { %795 = vmax.xlane.f32.xlu0 %v3258_v0  ;;  %797 = vmax.xlane.f32.xlu1 %v3254_v62 }
 0x1e3   : >> { %799 = vmax.xlane.f32.xlu0 %v3250_v30  ;;  %801 = vmax.xlane.f32.xlu1 %v3246_v10  ;;  %v851_v10 = vstv %s3310_s30  ;;  %s4829_s30 = smov %s722_s13 }
 0x1e4   : >> { %vm4141_vm0 = vcmp.eq.s32.totalorder %v4785_v14, %v851_v10 }
 0x1e7   : >> { %803 = vmax.xlane.f32.xlu0 %v3242_v11  ;;  %805 = vmax.xlane.f32.xlu1 %v3238_v12 }
 0x1eb   : >> { %807 = vmax.xlane.f32.xlu0 %v3234_v13  ;;  %809 = vmax.xlane.f32.xlu1 %v3230_v15 }
 0x1ef   : >> { %811 = vmax.xlane.f32.xlu0 %v3226_v16  ;;  %813 = vmax.xlane.f32.xlu1 %v3222_v17 }
 0x1f3   : >> { %815 = vmax.xlane.f32.xlu0 %v3218_v18  ;;  %817 = vmax.xlane.f32.xlu1 %v3214_v19 }
 0x1f7   : >> { %819 = vmax.xlane.f32.xlu0 %v3210_v20  ;;  %821 = vmax.xlane.f32.xlu1 %v3206_v21 }
 0x1fb   : >> { %823 = vmax.xlane.f32.xlu0 %v3202_v22  ;;  %825 = vmax.xlane.f32.xlu1 %v3198_v23 }
 0x1ff   : >> { %827 = vmax.xlane.f32.xlu0 %v3194_v24  ;;  %829 = vmax.xlane.f32.xlu1 %v3190_v25 }
 0x203   : >> { %831 = vmax.xlane.f32.xlu0 %v3186_v26  ;;  %833 = vmax.xlane.f32.xlu1 %v3182_v27 }
 0x254   : >> { %v772_v31 = vpop.xlane.xlu0 %771  ;;  %v776_v32 = vpop.xlane.xlu1 %775 }
 0x258   : >> { %v774_v35 = vpop.xlane.xlu0 %773  ;;  %v778_v36 = vpop.xlane.xlu1 %777 }
 0x25c   : >> { %v780_v43 = vpop.xlane.xlu0 %779  ;;  %v782_v44 = vpop.xlane.xlu1 %781 }
 0x260   : >> { %v784_v47 = vpop.xlane.xlu0 %783  ;;  %v786_v48 = vpop.xlane.xlu1 %785 }
 0x264   : >> { %v4123_v55 = vpop.xlane.xlu0 %787  ;;  %v4125_v59 = vpop.xlane.xlu1 %789 }
 0x268   : >> { %v4127_v4 = vpop.xlane.xlu0 %791  ;;  %v4129_v5 = vpop.xlane.xlu1 %793 }
 0x26c   : >> { %v4131_v6 = vpop.xlane.xlu0 %795  ;;  %v4133_v7 = vpop.xlane.xlu1 %797 }
 0x26d   : >> { %4784 = vst [vmem:[#allocation33_spill] sm:$0xff] %v4131_v6 }
 0x270   : >> { %v4135_v8 = vpop.xlane.xlu0 %799  ;;  %v4137_v27 = vpop.xlane.xlu1 %801 }
 0x274   : >> { %v804_v26 = vpop.xlane.xlu0 %803  ;;  %v806_v30 = vpop.xlane.xlu1 %805 }
 0x275   : >> { %v835_v34 = vmax.f32 %v772_v31, %v804_v26  ;;  %v836_v25 = vmax.f32 %v774_v35, %v806_v30 }
 0x277   : >> { %v4148_v3 = vsel %vm4141_vm0, %v835_v34, %v3178_v3   ;;  %vm869_vm1 = vcmp.ge.f32.partialorder %v3306_v39, %v835_v34  ;;  %vm901_vm2 = vcmp.ge.f32.partialorder %v3242_v11, %v835_v34  ;;  %v4154_v2 = vsel %vm4141_vm0, %v836_v25, %v3174_v2  }
 0x278   : >> { %4788 = vst [vmem:[#allocation34_spill] sm:$0xff] %v4148_v3  ;;  %4789 = vst [vmem:[#allocation35_spill] sm:$0xff] %v4154_v2  ;;  %v4156_v39 = vsel %vm869_vm1, -inf, %v3306_v39   ;;  %v4159_v11 = vsel %vm901_vm2, -inf, %v3242_v11   ;;  %vm870_vm3 = vcmp.ge.f32.partialorder %v3302_v37, %v836_v25  ;;  %vm902_vm4 = vcmp.ge.f32.partialorder %v3238_v12, %v836_v25  ;;  %v808_v26 = vpop.xlane.xlu0 %807  ;;  %v810_v10 = vpop.xlane.xlu1 %809 }
 0x279   : >> { %v4164_v37 = vsel %vm870_vm3, -inf, %v3302_v37   ;;  %v4167_v12 = vsel %vm902_vm4, -inf, %v3238_v12   ;;  %v837_v30 = vmax.f32 %v776_v32, %v808_v26  ;;  %v838_v34 = vmax.f32 %v778_v36, %v810_v10 }
 0x27b   : >> { %v4172_v1 = vsel %vm4141_vm0, %v837_v30, %v3170_v1   ;;  %vm871_vm5 = vcmp.ge.f32.partialorder %v3298_v51, %v837_v30  ;;  %vm903_vm6 = vcmp.ge.f32.partialorder %v3234_v13, %v837_v30  ;;  %v4179_v60 = vsel %vm4141_vm0, %v838_v34, %v3166_v60  }
 0x27c   : >> { %v4790_v31 = vmov %v4172_v1  ;;  %v4791_v35 = vmov %v4179_v60  ;;  %v4182_v51 = vsel %vm871_vm5, -inf, %v3298_v51   ;;  %v4185_v13 = vsel %vm903_vm6, -inf, %v3234_v13   ;;  %v812_v25 = vpop.xlane.xlu0 %811  ;;  %v814_v1 = vpop.xlane.xlu1 %813 }
 0x27d   : >> { %vm872_vm7 = vcmp.ge.f32.partialorder %v3294_v49, %v838_v34  ;;  %vm904_vm8 = vcmp.ge.f32.partialorder %v3230_v15, %v838_v34  ;;  %v839_v2 = vmax.f32 %v780_v43, %v812_v25  ;;  %v840_v60 = vmax.f32 %v782_v44, %v814_v1  ;;  %v4804_v1 = vld [vmem:[#allocation27_spill] sm:$0xff]  ;;  %935 = vst [vmem:[#allocation3 + $0x10] sm:$0xff] (%p4342_p13), %v4790_v31 }
 0x27e   : >> { %v4190_v49 = vsel %vm872_vm7, -inf, %v3294_v49   ;;  %v4193_v15 = vsel %vm904_vm8, -inf, %v3230_v15   ;;  %936 = vst [vmem:[#allocation3 + $0x18] sm:$0xff] (%p4342_p13), %v4791_v35 }
 0x27f   : >> { %v4198_v58 = vsel %vm4141_vm0, %v839_v2, %v3162_v58   ;;  %vm873_vm9 = vcmp.ge.f32.partialorder %v3290_v63, %v839_v2  ;;  %vm905_vm10 = vcmp.ge.f32.partialorder %v3226_v16, %v839_v2  ;;  %v4205_v57 = vsel %vm4141_vm0, %v840_v60, %v3158_v57   ;;  %v4806_v2 = vld [vmem:[#allocation32_spill] sm:$0xff] }
 0x280   : >> { %v4792_v32 = vmov %v4198_v58  ;;  %v4793_v36 = vmov %v4205_v57  ;;  %v4208_v63 = vsel %vm873_vm9, -inf, %v3290_v63   ;;  %v4211_v16 = vsel %vm905_vm10, -inf, %v3226_v16   ;;  %v816_v58 = vpop.xlane.xlu0 %815  ;;  %v818_v3 = vpop.xlane.xlu1 %817 }
 0x281   : >> { %vm874_vm11 = vcmp.ge.f32.partialorder %v3286_v61, %v840_v60  ;;  %vm906_vm12 = vcmp.ge.f32.partialorder %v3222_v17, %v840_v60  ;;  %v841_v43 = vmax.f32 %v784_v47, %v816_v58  ;;  %v842_v57 = vmax.f32 %v786_v48, %v818_v3  ;;  %v4807_v60 = vld [vmem:[#allocation29_spill] sm:$0xff]  ;;  %v4808_v58 = vld [vmem:[#allocation26_spill] sm:$0xff]  ;;  %v4828_v3 = vld [vmem:[#allocation34_spill] sm:$0xff]  ;;  %937 = vst [vmem:[#allocation3 + $0x20] sm:$0xff] (%p4342_p13), %v4792_v32 }
 0x282   : >> { %v4216_v61 = vsel %vm874_vm11, -inf, %v3286_v61   ;;  %v4219_v17 = vsel %vm906_vm12, -inf, %v3222_v17   ;;  %938 = vst [vmem:[#allocation3 + $0x28] sm:$0xff] (%p4342_p13), %v4793_v36 }
 0x283   : >> { %v4224_v56 = vsel %vm4141_vm0, %v841_v43, %v3154_v56   ;;  %vm875_vm13 = vcmp.ge.f32.partialorder %v3282_v29, %v841_v43  ;;  %vm907_vm14 = vcmp.ge.f32.partialorder %v3218_v18, %v841_v43  ;;  %v4231_v54 = vsel %vm4141_vm0, %v842_v57, %v3150_v54  }
 0x284   : >> { %v4794_v44 = vmov %v4224_v56  ;;  %v4795_v6 = vmov %v4231_v54  ;;  %v4234_v29 = vsel %vm875_vm13, -inf, %v3282_v29   ;;  %v4237_v18 = vsel %vm907_vm14, -inf, %v3218_v18   ;;  %v820_v56 = vpop.xlane.xlu0 %819  ;;  %v822_v47 = vpop.xlane.xlu1 %821 }
 0x285   : >> { %vm876_vm15 = vcmp.ge.f32.partialorder %v3278_v9, %v842_v57  ;;  %vm908_vm1 = vcmp.ge.f32.partialorder %v3214_v19, %v842_v57  ;;  %v843_v54 = vmax.f32 %v4123_v55, %v820_v56  ;;  %v844_v48 = vmax.f32 %v4125_v59, %v822_v47  ;;  %939 = vst [vmem:[#allocation3 + $0x30] sm:$0xff] (%p4342_p13), %v4794_v44 }
 0x286   : >> { %v4242_v9 = vsel %vm876_vm15, -inf, %v3278_v9   ;;  %v4245_v19 = vsel %vm908_vm1, -inf, %v3214_v19   ;;  %v4822_v56 = vmov %v4794_v44  ;;  %v4823_v57 = vmov %v4793_v36  ;;  %940 = vst [vmem:[#allocation3 + $0x38] sm:$0xff] (%p4342_p13), %v4795_v6 }
 0x287   : >> { %v4252_v53 = vsel %vm4141_vm0, %v843_v54, %v3146_v53   ;;  %vm877_vm2 = vcmp.ge.f32.partialorder %v3274_v40, %v843_v54  ;;  %vm909_vm3 = vcmp.ge.f32.partialorder %v3210_v20, %v843_v54  ;;  %v4259_v28 = vsel %vm4141_vm0, %v844_v48, %v3142_v28  }
 0x288   : >> { %v4796_v43 = vmov %v4252_v53  ;;  %v4797_v14 = vmov %v4259_v28  ;;  %v4262_v40 = vsel %vm877_vm2, -inf, %v3274_v40   ;;  %v4265_v20 = vsel %vm909_vm3, -inf, %v3210_v20   ;;  %v824_v53 = vpop.xlane.xlu0 %823  ;;  %v826_v55 = vpop.xlane.xlu1 %825 }
 0x289   : >> { %vm878_vm4 = vcmp.ge.f32.partialorder %v3270_v38, %v844_v48  ;;  %vm910_vm5 = vcmp.ge.f32.partialorder %v3206_v21, %v844_v48  ;;  %v845_v28 = vmax.f32 %v4127_v4, %v824_v53  ;;  %v846_v59 = vmax.f32 %v4129_v5, %v826_v55  ;;  %v4800_v5 = vld [vmem:[#allocation33_spill] sm:$0xff]  ;;  %941 = vst [vmem:[#allocation3 + $0x40] sm:$0xff] (%p4342_p13), %v4796_v43 }
 0x28a   : >> { %v4270_v38 = vsel %vm878_vm4, -inf, %v3270_v38   ;;  %v4273_v21 = vsel %vm910_vm5, -inf, %v3206_v21   ;;  %v4820_v53 = vmov %v4796_v43  ;;  %v4821_v54 = vmov %v4795_v6  ;;  %942 = vst [vmem:[#allocation3 + $0x48] sm:$0xff] (%p4342_p13), %v4797_v14 }
 0x28b   : >> { %v4280_v46 = vsel %vm4141_vm0, %v845_v28, %v3138_v46   ;;  %vm879_vm6 = vcmp.ge.f32.partialorder %v3266_v52, %v845_v28  ;;  %vm911_vm7 = vcmp.ge.f32.partialorder %v3202_v22, %v845_v28  ;;  %v4287_v45 = vsel %vm4141_vm0, %v846_v59, %v3134_v45  }
 0x28c   : >> { %v4798_v47 = vmov %v4280_v46  ;;  %v4799_v48 = vmov %v4287_v45  ;;  %v4290_v52 = vsel %vm879_vm6, -inf, %v3266_v52   ;;  %v927_v22 = vsel %vm911_vm7, -inf, %v3202_v22   ;;  %v828_v4 = vpop.xlane.xlu0 %827  ;;  %v830_v46 = vpop.xlane.xlu1 %829 }
 0x28d   : >> { %vm880_vm8 = vcmp.ge.f32.partialorder %v3262_v50, %v846_v59  ;;  %vm912_vm9 = vcmp.ge.f32.partialorder %v3198_v23, %v846_v59  ;;  %v847_v26 = vmax.f32 %v4800_v5, %v828_v4  ;;  %v848_v45 = vmax.f32 %v4133_v7, %v830_v46  ;;  %v4803_v7 = vld [vmem:[#allocation30_spill] sm:$0xff]  ;;  %943 = vst [vmem:[#allocation3 + $0x50] sm:$0xff] (%p4342_p13), %v4798_v47 }
 0x28e   : >> { %v4296_v50 = vsel %vm880_vm8, -inf, %v3262_v50   ;;  %v928_v23 = vsel %vm912_vm9, -inf, %v3198_v23   ;;  %v4818_v46 = vmov %v4798_v47  ;;  %v4819_v28 = vmov %v4797_v14  ;;  %944 = vst [vmem:[#allocation3 + $0x58] sm:$0xff] (%p4342_p13), %v4799_v48 }
 0x28f   : >> { %v4304_v42 = vsel %vm4141_vm0, %v847_v26, %v3130_v42   ;;  %vm881_vm10 = vcmp.ge.f32.partialorder %v3258_v0, %v847_v26  ;;  %vm913_vm11 = vcmp.ge.f32.partialorder %v3194_v24, %v847_v26  ;;  %v4311_v41 = vsel %vm4141_vm0, %v848_v45, %v3126_v41  }
 0x290   : >> { %v4801_v55 = vmov %v4304_v42  ;;  %v4802_v59 = vmov %v4311_v41  ;;  %v897_v0 = vsel %vm881_vm10, -inf, %v3258_v0   ;;  %v929_v24 = vsel %vm913_vm11, -inf, %v3194_v24   ;;  %v832_v10 = vpop.xlane.xlu0 %831  ;;  %v834_v30 = vpop.xlane.xlu1 %833 }
 0x291   : >> { %vm882_vm12 = vcmp.ge.f32.partialorder %v3254_v62, %v848_v45  ;;  %vm914_vm13 = vcmp.ge.f32.partialorder %v4803_v7, %v848_v45  ;;  %v849_v42 = vmax.f32 %v4135_v8, %v832_v10  ;;  %v850_v34 = vmax.f32 %v4137_v27, %v834_v30  ;;  %v4810_v8 = vld [vmem:[#allocation31_spill] sm:$0xff]  ;;  %v4811_v27 = vld [vmem:[#allocation28_spill] sm:$0xff]  ;;  %721 = sbr.rel (!%p4342_p13) target bundleno = 455 (0x1c7), region = 148  ;;  %945 = vst [vmem:[#allocation3 + $0x60] sm:$0xff] (%p4342_p13), %v4801_v55 }
 0x292   : >> { %v898_v62 = vsel %vm882_vm12, -inf, %v3254_v62   ;;  %v930_v25 = vsel %vm914_vm13, -inf, %v4803_v7   ;;  %v4817_v45 = vmov %v4799_v48  ;;  %v4830_v7 = vld [vmem:[#allocation34_spill] sm:$0xff] (%p4342_p13)  ;;  %946 = vst [vmem:[#allocation3 + $0x68] sm:$0xff] (%p4342_p13), %v4802_v59 }
 0x293   : >> { %v4324_v41 = vsel %vm4141_vm0, %v849_v42, %v4804_v1   ;;  %vm883_vm14 = vcmp.ge.f32.partialorder %v4806_v2, %v849_v42  ;;  %vm915_vm15 = vcmp.ge.f32.partialorder %v4807_v60, %v849_v42  ;;  %v4331_v33 = vsel %vm4141_vm0, %v850_v34, %v4808_v58   ;;  %933 = vst [vmem:[#allocation3] sm:$0xff] (%p4342_p13), %v4830_v7 }
 0x294   : >> { %v4805_v4 = vmov %v4324_v41  ;;  %v4809_v5 = vmov %v4331_v33  ;;  %v899_v30 = vsel %vm883_vm14, -inf, %v4806_v2   ;;  %v931_v26 = vsel %vm915_vm15, -inf, %v4807_v60   ;;  %v4827_v2 = vld [vmem:[#allocation35_spill] sm:$0xff] }
 0x295   : >> { %vm884_vm1 = vcmp.ge.f32.partialorder %v4810_v8, %v850_v34  ;;  %vm916_vm2 = vcmp.ge.f32.partialorder %v4811_v27, %v850_v34  ;;  %v4813_v33 = vmov %v4809_v5  ;;  %v4814_v34 = vmov %v4805_v4  ;;  %947 = vst [vmem:[#allocation3 + $0x70] sm:$0xff] (%p4342_p13), %v4805_v4  ;;  %948 = vst [vmem:[#allocation3 + $0x78] sm:$0xff] (%p4342_p13), %v4809_v5 }
 0x296   : >> { %v900_v10 = vsel %vm884_vm1, -inf, %v4810_v8   ;;  %v932_v27 = vsel %vm916_vm2, -inf, %v4811_v27   ;;  %v4815_v41 = vmov %v4802_v59  ;;  %v4816_v42 = vmov %v4801_v55  ;;  %v4831_v8 = vld [vmem:[#allocation35_spill] sm:$0xff] (%p4342_p13) }
 0x297   : >> { %v4824_v58 = vmov %v4792_v32  ;;  %v4825_v60 = vmov %v4791_v35  ;;  %v4826_v1 = vmov %v4790_v31  ;;  %934 = vst [vmem:[#allocation3 + $0x8] sm:$0xff] (%p4342_p13), %v4831_v8 }
 0x298 PF: > { %s4832_s29 = sld [smem:[#allocation21_spill]] }
 0x29e   : > { %p949_p2 = scmp.eq.s32.totalorder %s4832_s29, 1 }
 0x2a0   : > { %p950_p9 = pnand %p949_p2, %p401_p4 }
 0x2a1   : > { %v970_v11 = vlaneseq (!%p950_p9)  ;;  %v956_v12 = vld [vmem:[#allocation3 + $0x10] sm:$0xff] (!%p950_p9)  ;;  %v954_v14 = vld [vmem:[#allocation3] sm:$0xff] (!%p950_p9)  ;;  %v957_v15 = vld [vmem:[#allocation3 + $0x18] sm:$0xff] (!%p950_p9)  ;;  %vm1021_vm3 = vcmask (!%p950_p9), 7168  }
 0x2a2   : > { %953 = sbr.rel (%p950_p9) target bundleno = 850 (0x352), region = 71  ;;  %v955_v16 = vld [vmem:[#allocation3 + $0x8] sm:$0xff] (!%p950_p9)  ;;  %v958_v22 = vld [vmem:[#allocation3 + $0x20] sm:$0xff] (!%p950_p9)  ;;  %v961_v37 = vld [vmem:[#allocation3 + $0x38] sm:$0xff] (!%p950_p9) }
 0x2a3   : > { %v971_v13 = vand.u32 (!%p950_p9), 127, %v970_v11  ;;  %v959_v21 = vld [vmem:[#allocation3 + $0x28] sm:$0xff] (!%p950_p9)  ;;  %v960_v38 = vld [vmem:[#allocation3 + $0x30] sm:$0xff] (!%p950_p9)  ;;  %v962_v50 = vld [vmem:[#allocation3 + $0x40] sm:$0xff] (!%p950_p9) }
 0x2a4   : > { %v963_v49 = vld [vmem:[#allocation3 + $0x48] sm:$0xff] (!%p950_p9)  ;;  %v965_v61 = vld [vmem:[#allocation3 + $0x58] sm:$0xff] (!%p950_p9)  ;;  %v964_v62 = vld [vmem:[#allocation3 + $0x50] sm:$0xff] (!%p950_p9) }
 0x2a5   : > { %vm972_vm0 = vcmp.lt.s32.totalorder (!%p950_p9), %v971_v13, 4  ;;  %v967_v9 = vld [vmem:[#allocation3 + $0x68] sm:$0xff] (!%p950_p9)  ;;  %v966_v29 = vld [vmem:[#allocation3 + $0x60] sm:$0xff] (!%p950_p9)  ;;  %v969_v31 = vld [vmem:[#allocation3 + $0x78] sm:$0xff] (!%p950_p9) }
 0x2a6   : > { %v975_v17 = vsel (!%p950_p9), %vm972_vm0, %v956_v12, inf  ;;  %v973_v18 = vsel (!%p950_p9), %vm972_vm0, %v954_v14, inf  ;;  %v976_v19 = vsel (!%p950_p9), %vm972_vm0, %v957_v15, inf  ;;  %v974_v20 = vsel (!%p950_p9), %vm972_vm0, %v955_v16, inf  ;;  %v968_v35 = vld [vmem:[#allocation3 + $0x70] sm:$0xff] (!%p950_p9) }
 0x2a7   : > { %993 = vmin.xlane.f32.xlu1 (!%p950_p9), %v975_v17  ;;  %989 = vmin.xlane.f32.xlu0 (!%p950_p9), %v973_v18  ;;  %v978_v23 = vsel (!%p950_p9), %vm972_vm0, %v959_v21, inf  ;;  %v977_v24 = vsel (!%p950_p9), %vm972_vm0, %v958_v22, inf  ;;  %v980_v39 = vsel (!%p950_p9), %vm972_vm0, %v961_v37, inf  ;;  %v979_v40 = vsel (!%p950_p9), %vm972_vm0, %v960_v38, inf }
 0x2a8   : > { %v982_v51 = vsel (!%p950_p9), %vm972_vm0, %v963_v49, inf  ;;  %v981_v52 = vsel (!%p950_p9), %vm972_vm0, %v962_v50, inf  ;;  %v984_v63 = vsel (!%p950_p9), %vm972_vm0, %v965_v61, inf  ;;  %v983_v0 = vsel (!%p950_p9), %vm972_vm0, %v964_v62, inf }
 0x2a9   : > { %v986_v33 = vsel %vm972_vm0, %v967_v9, inf  ;;  %v985_v6 = vsel %vm972_vm0, %v966_v29, inf  ;;  %v988_v25 = vsel %vm972_vm0, %v969_v31, inf  ;;  %v987_v32 = vsel %vm972_vm0, %v968_v35, inf }
 0x2ab   : > { %995 = vmin.xlane.f32.xlu1 %v976_v19  ;;  %991 = vmin.xlane.f32.xlu0 %v974_v20 }
 0x2af   : > { %999 = vmin.xlane.f32.xlu1 %v978_v23  ;;  %997 = vmin.xlane.f32.xlu0 %v977_v24 }
 0x2b3   : > { %1003 = vmin.xlane.f32.xlu1 %v980_v39  ;;  %1001 = vmin.xlane.f32.xlu0 %v979_v40 }
 0x2b7   : > { %1007 = vmin.xlane.f32.xlu1 %v982_v51  ;;  %1005 = vmin.xlane.f32.xlu0 %v981_v52 }
 0x2bb   : > { %1011 = vmin.xlane.f32.xlu1 %v984_v63  ;;  %1009 = vmin.xlane.f32.xlu0 %v983_v0 }
 0x2bf   : > { %1015 = vmin.xlane.f32.xlu1 %v986_v33  ;;  %1013 = vmin.xlane.f32.xlu0 %v985_v6 }
 0x2c3   : > { %1019 = vmin.xlane.f32.xlu1 %v988_v25  ;;  %1017 = vmin.xlane.f32.xlu0 %v987_v32 }
 0x334   : > { %v994_v36 = vpop.xlane.xlu1 %993  ;;  %v990_v3 = vpop.xlane.xlu0 %989 }
 0x335   : > { %1024 = vst.msk [vmem:[#allocation4 + $0x10] sm:$0xff] %vm1021_vm3, %v994_v36  ;;  %1022 = vst.msk [vmem:[#allocation4] sm:$0xff] %vm1021_vm3, %v990_v3 }
 0x338   : > { %v996_v57 = vpop.xlane.xlu1 %995  ;;  %v992_v44 = vpop.xlane.xlu0 %991 }
 0x339   : > { %1025 = vst.msk [vmem:[#allocation4 + $0x18] sm:$0xff] %vm1021_vm3, %v996_v57  ;;  %1023 = vst.msk [vmem:[#allocation4 + $0x8] sm:$0xff] %vm1021_vm3, %v992_v44 }
 0x33c   : > { %v1000_v56 = vpop.xlane.xlu1 %999  ;;  %v998_v54 = vpop.xlane.xlu0 %997 }
 0x33d   : > { %1027 = vst.msk [vmem:[#allocation4 + $0x28] sm:$0xff] %vm1021_vm3, %v1000_v56  ;;  %1026 = vst.msk [vmem:[#allocation4 + $0x20] sm:$0xff] %vm1021_vm3, %v998_v54 }
 0x340   : > { %v1004_v43 = vpop.xlane.xlu1 %1003  ;;  %v1002_v53 = vpop.xlane.xlu0 %1001 }
 0x341   : > { %1029 = vst.msk [vmem:[#allocation4 + $0x38] sm:$0xff] %vm1021_vm3, %v1004_v43  ;;  %1028 = vst.msk [vmem:[#allocation4 + $0x30] sm:$0xff] %vm1021_vm3, %v1002_v53 }
 0x344   : > { %v1008_v28 = vpop.xlane.xlu1 %1007  ;;  %v1006_v47 = vpop.xlane.xlu0 %1005 }
 0x345   : > { %1031 = vst.msk [vmem:[#allocation4 + $0x48] sm:$0xff] %vm1021_vm3, %v1008_v28  ;;  %1030 = vst.msk [vmem:[#allocation4 + $0x40] sm:$0xff] %vm1021_vm3, %v1006_v47 }
 0x348   : > { %v1012_v48 = vpop.xlane.xlu1 %1011  ;;  %v1010_v46 = vpop.xlane.xlu0 %1009 }
 0x349   : > { %1033 = vst.msk [vmem:[#allocation4 + $0x58] sm:$0xff] %vm1021_vm3, %v1012_v48  ;;  %1032 = vst.msk [vmem:[#allocation4 + $0x50] sm:$0xff] %vm1021_vm3, %v1010_v46 }
 0x34c   : > { %v1016_v26 = vpop.xlane.xlu1 %1015  ;;  %v1014_v45 = vpop.xlane.xlu0 %1013 }
 0x34d   : > { %1035 = vst.msk [vmem:[#allocation4 + $0x68] sm:$0xff] %vm1021_vm3, %v1016_v26  ;;  %1034 = vst.msk [vmem:[#allocation4 + $0x60] sm:$0xff] %vm1021_vm3, %v1014_v45 }
 0x350   : > { %v1020_v55 = vpop.xlane.xlu1 %1019  ;;  %v1018_v59 = vpop.xlane.xlu0 %1017 }
 0x351   : > { %1037 = vst.msk [vmem:[#allocation4 + $0x78] sm:$0xff] %vm1021_vm3, %v1020_v55  ;;  %1036 = vst.msk [vmem:[#allocation4 + $0x70] sm:$0xff] %vm1021_vm3, %v1018_v59 }
 0x352 PF: > { %p1038_p3 = scmp.eq.s32.totalorder %s3102_s28, 1 }
 0x354   : > { %p1039_p10 = pnand %p1038_p3, %p402_p8 }
 0x355   : > { %v3319_v10 = vmov (!%p1039_p10), 0.0  }
 0x356   : > { %1042 = sbr.rel (%p1039_p10) target bundleno = 862 (0x35e), region = 75  ;;  %1043 = vst [vmem:[#allocation5] sm:$0xff] (!%p1039_p10), %v3319_v10  ;;  %1044 = vst [vmem:[#allocation5 + $0x8] sm:$0xff] (!%p1039_p10), %v3319_v10 }
 0x357   : > { %1045 = vst [vmem:[#allocation5 + $0x10] sm:$0xff] (!%p1039_p10), %v3319_v10  ;;  %1046 = vst [vmem:[#allocation5 + $0x18] sm:$0xff] (!%p1039_p10), %v3319_v10 }
 0x358   : > { %1047 = vst [vmem:[#allocation5 + $0x20] sm:$0xff] (!%p1039_p10), %v3319_v10  ;;  %1048 = vst [vmem:[#allocation5 + $0x28] sm:$0xff] (!%p1039_p10), %v3319_v10 }
 0x359   : > { %1049 = vst [vmem:[#allocation5 + $0x30] sm:$0xff] (!%p1039_p10), %v3319_v10  ;;  %1050 = vst [vmem:[#allocation5 + $0x38] sm:$0xff] (!%p1039_p10), %v3319_v10 }
 0x35a   : > { %1051 = vst [vmem:[#allocation5 + $0x40] sm:$0xff] (!%p1039_p10), %v3319_v10  ;;  %1052 = vst [vmem:[#allocation5 + $0x48] sm:$0xff] (!%p1039_p10), %v3319_v10 }
 0x35b   : > { %1053 = vst [vmem:[#allocation5 + $0x50] sm:$0xff] (!%p1039_p10), %v3319_v10  ;;  %1054 = vst [vmem:[#allocation5 + $0x58] sm:$0xff] (!%p1039_p10), %v3319_v10 }
 0x35c   : > { %1055 = vst [vmem:[#allocation5 + $0x60] sm:$0xff] (!%p1039_p10), %v3319_v10  ;;  %1056 = vst [vmem:[#allocation5 + $0x68] sm:$0xff] (!%p1039_p10), %v3319_v10 }
 0x35d   : > { %1057 = vst [vmem:[#allocation5 + $0x70] sm:$0xff] %v3319_v10  ;;  %1058 = vst [vmem:[#allocation5 + $0x78] sm:$0xff] %v3319_v10 }
 0x35e PF: > { %p1844_p1 = scmp.ne.s32.totalorder %s3102_s28, 1 }
 0x35f   : > { %v1081_v30 = vld [vmem:[#allocation4 + $0x8] sm:$0xff] (!%p1844_p1)  ;;  %v1080_v42 = vld [vmem:[#allocation4] sm:$0xff] (!%p1844_p1)  ;;  %v3320_v34 = vmov (!%p1844_p1), 0   ;;  %v1242_v58 = vld [vmem:[%s3642_s1 + $0x10] sm:$0xff] (!%p1844_p1)  ;;  %s4834_s10 = sld [smem:[#allocation21_spill]] (!%p1844_p1) }
 0x360   : > { %1061 = sbr.rel (%p1844_p1) target bundleno = 1238 (0x4d6), region = 79  ;;  %2669 = vset.pattern.permute.xlu1 (!%p1844_p1), %v3320_v34  ;;  %2668 = vset.pattern.permute.xlu0 (!%p1844_p1), %v3320_v34  ;;  %v1089_v1 = vld [vmem:[#allocation4 + $0x48] sm:$0xff] (!%p1844_p1)  ;;  %v1088_v41 = vld [vmem:[#allocation4 + $0x40] sm:$0xff] (!%p1844_p1)  ;;  %v1243_v5 = vld [vmem:[%s3642_s1 + $0x18] sm:$0xff] (!%p1844_p1) }
 0x361   : > { %1103 = vperm.xlu1 (!%p1844_p1), %2669, %v1081_v30   ;;  %1098 = vperm.xlu0 (!%p1844_p1), %2668, %v1080_v42   ;;  %v1240_v4 = vld [vmem:[%s3642_s1] sm:$0xff] (!%p1844_p1)  ;;  %v1241_v2 = vld [vmem:[%s3642_s1 + $0x8] sm:$0xff] (!%p1844_p1)  ;;  %v1090_v27 = vld [vmem:[#allocation4 + $0x50] sm:$0xff] (!%p1844_p1)  ;;  %v2082_v8 = vpack.c.bf16 (!%p1844_p1), %v1243_v5, %v1242_v58 }
 0x362   : > { %v2078_v60 = vpack.c.bf16 (!%p1844_p1), %v1241_v2, %v1240_v4  ;;  %v1082_v7 = vld [vmem:[#allocation4 + $0x10] sm:$0xff] (!%p1844_p1)  ;;  %v1244_v11 = vld [vmem:[%s3642_s1 + $0x20] sm:$0xff] (!%p1844_p1)  ;;  %v1245_v12 = vld [vmem:[%s3642_s1 + $0x28] sm:$0xff] (!%p1844_p1) }
 0x363   : > { %v1091_v13 = vld [vmem:[#allocation4 + $0x58] sm:$0xff] (!%p1844_p1)  ;;  %v2086_v15 = vpack.c.bf16 (!%p1844_p1), %v1245_v12, %v1244_v11  ;;  %v1246_v16 = vld [vmem:[%s3642_s1 + $0x30] sm:$0xff] (!%p1844_p1)  ;;  %v1092_v18 = vld [vmem:[#allocation4 + $0x60] sm:$0xff] (!%p1844_p1) }
 0x364   : > { %2079 = vmatprep.subr.bf16.mxu0 (!%p1844_p1), %v2078_v60  ;;  %2126 = vmatprep.subr.bf16.mxu1 (!%p1844_p1), %v2078_v60  ;;  %v1083_v14 = vld [vmem:[#allocation4 + $0x18] sm:$0xff] (!%p1844_p1)  ;;  %v1084_v19 = vld [vmem:[#allocation4 + $0x20] sm:$0xff] (!%p1844_p1)  ;;  %v1249_v22 = vld [vmem:[%s3642_s1 + $0x48] sm:$0xff] (!%p1844_p1) }
 0x365   : > { %1143 = vperm.xlu1 (!%p1844_p1), %2669, %v1089_v1   ;;  %1138 = vperm.xlu0 (!%p1844_p1), %2668, %v1088_v41   ;;  %v1247_v17 = vld [vmem:[%s3642_s1 + $0x38] sm:$0xff] (!%p1844_p1)  ;;  %v1248_v21 = vld [vmem:[%s3642_s1 + $0x40] sm:$0xff] (!%p1844_p1)  ;;  %v1093_v23 = vld [vmem:[#allocation4 + $0x68] sm:$0xff] (!%p1844_p1)  ;;  %s1845_s0 = sshll.u32 (!%p1844_p1), %s4834_s10, 7 }
 0x366   : > { %2081 = vmatpush3.bf16.msra.mxu0 (!%p1844_p1), %v2078_v60  ;;  %2134 = vmatpush3.bf16.msra.mxu1 (!%p1844_p1), %v2078_v60  ;;  %v2090_v20 = vpack.c.bf16 (!%p1844_p1), %v1247_v17, %v1246_v16  ;;  %v1085_v24 = vld [vmem:[#allocation4 + $0x28] sm:$0xff] (!%p1844_p1)  ;;  %v2094_v37 = vpack.c.bf16 (!%p1844_p1), %v1249_v22, %v1248_v21  ;;  %v1250_v38 = vld [vmem:[%s3642_s1 + $0x50] sm:$0xff] (!%p1844_p1)  ;;  %v1251_v39 = vld [vmem:[%s3642_s1 + $0x58] sm:$0xff] (!%p1844_p1)  ;;  %s4562_s15 = scalar_lea.vmem (!%p1844_p1), [#allocation2], %s1845_s0 }
 0x367   : > { %2083 = vmatprep.subr.bf16.mxu0 %v2082_v8  ;;  %2127 = vmatprep.subr.bf16.mxu1 %v2082_v8  ;;  %v1094_v40 = vld [vmem:[#allocation4 + $0x70] sm:$0xff]  ;;  %v2098_v50 = vpack.c.bf16 %v1251_v39, %v1250_v38  ;;  %v1252_v51 = vld [vmem:[%s3642_s1 + $0x60] sm:$0xff]  ;;  %v1253_v52 = vld [vmem:[%s3642_s1 + $0x68] sm:$0xff] }
 0x368   : > { %v1086_v49 = vld [vmem:[#allocation4 + $0x30] sm:$0xff]  ;;  %v1095_v61 = vld [vmem:[#allocation4 + $0x78] sm:$0xff]  ;;  %v2102_v63 = vpack.c.bf16 %v1253_v52, %v1252_v51  ;;  %v1065_v33 = vld [vmem:[%s4562_s15 + $0x8] sm:$0xff] }
 0x369   : > { %1148 = vperm.xlu1 %2669, %v1090_v27   ;;  %1108 = vperm.xlu0 %2668, %v1082_v7   ;;  %v1087_v62 = vld [vmem:[#allocation4 + $0x38] sm:$0xff]  ;;  %v1254_v0 = vld [vmem:[%s3642_s1 + $0x70] sm:$0xff]  ;;  %v1064_v6 = vld [vmem:[%s4562_s15] sm:$0xff] }
 0x36a   : > { %2085 = vmatpush3.bf16.msra.mxu0 %v2082_v8  ;;  %2135 = vmatpush3.bf16.msra.mxu1 %v2082_v8  ;;  %v1255_v9 = vld [vmem:[%s3642_s1 + $0x78] sm:$0xff]  ;;  %v1073_v36 = vld [vmem:[%s4562_s15 + $0x48] sm:$0xff]  ;;  %v1072_v3 = vld [vmem:[%s4562_s15 + $0x40] sm:$0xff] }
 0x36b   : > { %2087 = vmatprep.subr.bf16.mxu0 %v2086_v15  ;;  %2128 = vmatprep.subr.bf16.mxu1 %v2086_v15  ;;  %v2106_v29 = vpack.c.bf16 %v1255_v9, %v1254_v0  ;;  %v1074_v43 = vld [vmem:[%s4562_s15 + $0x50] sm:$0xff]  ;;  %v1075_v26 = vld [vmem:[%s4562_s15 + $0x58] sm:$0xff]  ;;  %v1076_v42 = vld [vmem:[%s4562_s15 + $0x60] sm:$0xff] }
 0x36c   : > { %v1066_v53 = vld [vmem:[%s4562_s15 + $0x10] sm:$0xff]  ;;  %v1067_v45 = vld [vmem:[%s4562_s15 + $0x18] sm:$0xff]  ;;  %v1068_v34 = vld [vmem:[%s4562_s15 + $0x20] sm:$0xff] }
 0x36d   : > { %1153 = vperm.xlu1 %2669, %v1091_v13   ;;  %1113 = vperm.xlu0 %2668, %v1083_v14   ;;  %v1077_v60 = vld [vmem:[%s4562_s15 + $0x68] sm:$0xff]  ;;  %v1078_v11 = vld [vmem:[%s4562_s15 + $0x70] sm:$0xff]  ;;  %v1079_v17 = vld [vmem:[%s4562_s15 + $0x78] sm:$0xff] }
 0x36e   : > { %2089 = vmatpush3.bf16.msra.mxu0 %v2086_v15  ;;  %2136 = vmatpush3.bf16.msra.mxu1 %v2086_v15  ;;  %v1069_v58 = vld [vmem:[%s4562_s15 + $0x28] sm:$0xff]  ;;  %v1070_v12 = vld [vmem:[%s4562_s15 + $0x30] sm:$0xff]  ;;  %v1235_v0 = vld [vmem:[#allocation5 + $0x58] sm:$0xff] }
 0x36f   : > { %2091 = vmatprep.subr.bf16.mxu0 %v2090_v20  ;;  %2129 = vmatprep.subr.bf16.mxu1 %v2090_v20  ;;  %v1226_v9 = vld [vmem:[#allocation5 + $0x10] sm:$0xff] }
 0x371   : > { %1158 = vperm.xlu1 %2669, %v1092_v18   ;;  %1118 = vperm.xlu0 %2668, %v1084_v19   ;;  %v1071_v18 = vld [vmem:[%s4562_s15 + $0x38] sm:$0xff] }
 0x372   : > { %2093 = vmatpush3.bf16.msra.mxu0 %v2090_v20  ;;  %2137 = vmatpush3.bf16.msra.mxu1 %v2090_v20 }
 0x373   : > { %2095 = vmatprep.subr.bf16.mxu0 %v2094_v37  ;;  %2130 = vmatprep.subr.bf16.mxu1 %v2094_v37 }
 0x375   : > { %1163 = vperm.xlu1 %2669, %v1093_v23   ;;  %1123 = vperm.xlu0 %2668, %v1085_v24   ;;  %v1225_v23 = vld [vmem:[#allocation5 + $0x8] sm:$0xff]  ;;  %v1224_v24 = vld [vmem:[#allocation5] sm:$0xff] }
 0x376   : > { %2097 = vmatpush3.bf16.msra.mxu0 %v2094_v37  ;;  %2138 = vmatpush3.bf16.msra.mxu1 %v2094_v37 }
 0x377   : > { %2099 = vmatprep.subr.bf16.mxu0 %v2098_v50  ;;  %2131 = vmatprep.subr.bf16.mxu1 %v2098_v50 }
 0x379   : > { %1168 = vperm.xlu1 %2669, %v1094_v40   ;;  %1128 = vperm.xlu0 %2668, %v1086_v49   ;;  %v1233_v49 = vld [vmem:[#allocation5 + $0x48] sm:$0xff] }
 0x37a   : > { %2101 = vmatpush3.bf16.msra.mxu0 %v2098_v50  ;;  %2139 = vmatpush3.bf16.msra.mxu1 %v2098_v50  ;;  %v1232_v50 = vld [vmem:[#allocation5 + $0x40] sm:$0xff] }
 0x37b   : > { %2103 = vmatprep.subr.bf16.mxu0 %v2102_v63  ;;  %2132 = vmatprep.subr.bf16.mxu1 %v2102_v63 }
 0x37d   : > { %1173 = vperm.xlu1 %2669, %v1095_v61   ;;  %1133 = vperm.xlu0 %2668, %v1087_v62  }
 0x37e   : > { %2105 = vmatpush3.bf16.msra.mxu0 %v2102_v63  ;;  %2140 = vmatpush3.bf16.msra.mxu1 %v2102_v63  ;;  %v1227_v63 = vld [vmem:[#allocation5 + $0x18] sm:$0xff] }
 0x37f   : > { %2107 = vmatprep.subr.bf16.mxu0 %v2106_v29  ;;  %2133 = vmatprep.subr.bf16.mxu1 %v2106_v29 }
 0x382   : > { %2109 = vmatpush3.bf16.msra.mxu0 %v2106_v29  ;;  %2141 = vmatpush3.bf16.msra.mxu1 %v2106_v29  ;;  %v1234_v29 = vld [vmem:[#allocation5 + $0x50] sm:$0xff] }
 0x3e0   : > { %v1104_v31 = vpop.permute.xlu1 %1103  ;;  %v1099_v35 = vpop.permute.xlu0 %1098 }
 0x3e1   : > { %vm1177_vm4 = vcmp.ge.f32.partialorder %v1065_v33, %v1104_v31  ;;  %vm1176_vm5 = vcmp.ge.f32.partialorder %v1064_v6, %v1099_v35 }
 0x3e2   : > { %v1193_v25 = vsel %vm1177_vm4, %v1065_v33, 0.0  ;;  %v1192_v32 = vsel %vm1176_vm5, %v1064_v6, 0.0  ;;  %2022 = vmatprep.mubr.msk.f32.mxu0 %vm1176_vm5, %v1064_v6 }
 0x3e3   : > { %1209 = vst [vmem:[%s3662_s18 + $0x8] sm:$0xff] %v1193_v25  ;;  %1208 = vst [vmem:[%s3662_s18] sm:$0xff] %v1192_v32  ;;  %2023 = vmatmul.mubr.msk.f32.vlgmr.msra.gmra.mrb[0].mxu0 %vm1177_vm4, %v1065_v33 }
 0x3e4   : > { %v1144_v57 = vpop.permute.xlu1 %1143  ;;  %v1139_v44 = vpop.permute.xlu0 %1138 }
 0x3e5   : > { %vm1185_vm6 = vcmp.ge.f32.partialorder %v1073_v36, %v1144_v57  ;;  %vm1184_vm7 = vcmp.ge.f32.partialorder %v1072_v3, %v1139_v44  ;;  %v1229_v57 = vld [vmem:[#allocation5 + $0x28] sm:$0xff] }
 0x3e6   : > { %v1201_v56 = vsel %vm1185_vm6, %v1073_v36, 0.0  ;;  %v1200_v54 = vsel %vm1184_vm7, %v1072_v3, 0.0  ;;  %2034 = vmatprep.mubr.msk.f32.mxu1 %vm1184_vm7, %v1072_v3  ;;  %v1237_v44 = vld [vmem:[#allocation5 + $0x68] sm:$0xff] }
 0x3e7   : > { %1217 = vst [vmem:[%s3662_s18 + $0x48] sm:$0xff] %v1201_v56  ;;  %1216 = vst [vmem:[%s3662_s18 + $0x40] sm:$0xff] %v1200_v54  ;;  %2035 = vmatmul.mubr.msk.f32.vlgmr.msra.gmra.mrb[0].mxu1 %vm1185_vm6, %v1073_v36  ;;  %v1228_v56 = vld [vmem:[#allocation5 + $0x20] sm:$0xff] }
 0x3e8   : > { %v1149_v28 = vpop.permute.xlu1 %1148  ;;  %v1109_v47 = vpop.permute.xlu0 %1108  ;;  %v1236_v54 = vld [vmem:[#allocation5 + $0x60] sm:$0xff] }
 0x3e9   : > { %vm1186_vm8 = vcmp.ge.f32.partialorder %v1074_v43, %v1149_v28  ;;  %vm1178_vm9 = vcmp.ge.f32.partialorder %v1066_v53, %v1109_v47 }
 0x3ea   : > { %v1202_v48 = vsel %vm1186_vm8, %v1074_v43, 0.0  ;;  %v1194_v46 = vsel %vm1178_vm9, %v1066_v53, 0.0  ;;  %2025 = vmatprep.mubr.msk.f32.mxu0 %vm1178_vm9, %v1066_v53  ;;  %2037 = vmatprep.mubr.msk.f32.mxu1 %vm1186_vm8, %v1074_v43 }
 0x3eb   : > { %1218 = vst [vmem:[%s3662_s18 + $0x50] sm:$0xff] %v1202_v48  ;;  %1210 = vst [vmem:[%s3662_s18 + $0x10] sm:$0xff] %v1194_v46 }
 0x3ec   : > { %v1154_v55 = vpop.permute.xlu1 %1153  ;;  %v1114_v59 = vpop.permute.xlu0 %1113 }
 0x3ed   : > { %vm1187_vm10 = vcmp.ge.f32.partialorder %v1075_v26, %v1154_v55  ;;  %vm1179_vm11 = vcmp.ge.f32.partialorder %v1067_v45, %v1114_v59  ;;  %v1231_v55 = vld [vmem:[#allocation5 + $0x38] sm:$0xff] }
 0x3ee   : > { %v1203_v10 = vsel %vm1187_vm10, %v1075_v26, 0.0  ;;  %v1195_v30 = vsel %vm1179_vm11, %v1067_v45, 0.0  ;;  %2026 = vmatmul.mubr.msk.f32.gmra.mrb[2].mxu0 %vm1179_vm11, %v1067_v45  ;;  %2038 = vmatmul.mubr.msk.f32.gmra.mrb[2].mxu1 %vm1187_vm10, %v1075_v26  ;;  %v1239_v59 = vld [vmem:[#allocation5 + $0x78] sm:$0xff] }
 0x3ef   : > { %1219 = vst [vmem:[%s3662_s18 + $0x58] sm:$0xff] %v1203_v10  ;;  %1211 = vst [vmem:[%s3662_s18 + $0x18] sm:$0xff] %v1195_v30  ;;  %v1230_v10 = vld [vmem:[#allocation5 + $0x30] sm:$0xff] }
 0x3f0   : > { %v1159_v1 = vpop.permute.xlu1 %1158  ;;  %v1119_v41 = vpop.permute.xlu0 %1118  ;;  %v1238_v30 = vld [vmem:[#allocation5 + $0x70] sm:$0xff] }
 0x3f1   : > { %vm1188_vm12 = vcmp.ge.f32.partialorder %v1076_v42, %v1159_v1  ;;  %vm1180_vm13 = vcmp.ge.f32.partialorder %v1068_v34, %v1119_v41 }
 0x3f2   : > { %v1204_v4 = vsel %vm1188_vm12, %v1076_v42, 0.0  ;;  %v1196_v2 = vsel %vm1180_vm13, %v1068_v34, 0.0  ;;  %2028 = vmatprep.mubr.msk.f32.mxu0 %vm1180_vm13, %v1068_v34  ;;  %2040 = vmatprep.mubr.msk.f32.mxu1 %vm1188_vm12, %v1076_v42 }
 0x3f3   : > { %1220 = vst [vmem:[%s3662_s18 + $0x60] sm:$0xff] %v1204_v4  ;;  %1212 = vst [vmem:[%s3662_s18 + $0x20] sm:$0xff] %v1196_v2 }
 0x3f4   : > { %v1164_v5 = vpop.permute.xlu1 %1163  ;;  %v1124_v27 = vpop.permute.xlu0 %1123 }
 0x3f5   : > { %vm1189_vm14 = vcmp.ge.f32.partialorder %v1077_v60, %v1164_v5  ;;  %vm1181_vm15 = vcmp.ge.f32.partialorder %v1069_v58, %v1124_v27 }
 0x3f6   : > { %v1205_v7 = vsel %vm1189_vm14, %v1077_v60, 0.0  ;;  %v1197_v8 = vsel %vm1181_vm15, %v1069_v58, 0.0  ;;  %2029 = vmatmul.mubr.msk.f32.gmra.mrb[4].mxu0 %vm1181_vm15, %v1069_v58  ;;  %2041 = vmatmul.mubr.msk.f32.gmra.mrb[4].mxu1 %vm1189_vm14, %v1077_v60 }
 0x3f7   : > { %1221 = vst [vmem:[%s3662_s18 + $0x68] sm:$0xff] %v1205_v7  ;;  %1213 = vst [vmem:[%s3662_s18 + $0x28] sm:$0xff] %v1197_v8 }
 0x3f8   : > { %v1169_v13 = vpop.permute.xlu1 %1168  ;;  %v1129_v14 = vpop.permute.xlu0 %1128 }
 0x3f9   : > { %vm1190_vm1 = vcmp.ge.f32.partialorder %v1078_v11, %v1169_v13  ;;  %vm1182_vm2 = vcmp.ge.f32.partialorder %v1070_v12, %v1129_v14 }
 0x3fa   : > { %v1206_v15 = vsel %vm1190_vm1, %v1078_v11, 0.0  ;;  %v1198_v16 = vsel %vm1182_vm2, %v1070_v12, 0.0  ;;  %2031 = vmatprep.mubr.msk.f32.mxu0 %vm1182_vm2, %v1070_v12  ;;  %2043 = vmatprep.mubr.msk.f32.mxu1 %vm1190_vm1, %v1078_v11 }
 0x3fb   : > { %1222 = vst [vmem:[%s3662_s18 + $0x70] sm:$0xff] %v1206_v15  ;;  %1214 = vst [vmem:[%s3662_s18 + $0x30] sm:$0xff] %v1198_v16 }
 0x3fc   : > { %v1174_v19 = vpop.permute.xlu1 %1173  ;;  %v1134_v20 = vpop.permute.xlu0 %1133 }
 0x3fd   : > { %vm1191_vm0 = vcmp.ge.f32.partialorder %v1079_v17, %v1174_v19  ;;  %vm1183_vm3 = vcmp.ge.f32.partialorder %v1071_v18, %v1134_v20 }
 0x3fe   : > { %v1207_v21 = vsel %vm1191_vm0, %v1079_v17, 0.0  ;;  %v1199_v22 = vsel %vm1183_vm3, %v1071_v18, 0.0  ;;  %2032 = vmatmul.mubr.msk.f32.gmra.mrb[6].mxu0 %vm1183_vm3, %v1071_v18  ;;  %2044 = vmatmul.mubr.msk.f32.gmra.mrb[6].mxu1 %vm1191_vm0, %v1079_v17 }
 0x3ff   : > { %1223 = vst [vmem:[%s3662_s18 + $0x78] sm:$0xff] %v1207_v21  ;;  %1215 = vst [vmem:[%s3662_s18 + $0x38] sm:$0xff] %v1199_v22 }
 0x4b6   : > { %v2024_v37 = vpop.f32.mrb[0].mxu0 }
 0x4b7   : > { %v1402_v38 = vadd.f32 %v2024_v37, %v1225_v23  ;;  %v1322_v39 = vpop.f32.mrb[1].mxu0 }
 0x4b8   : > { %v1401_v40 = vadd.f32 %v1322_v39, %v1224_v24 }
 0x4b9   : > { %1418 = vst [vmem:[#allocation5 + $0x8] sm:$0xff] %v1402_v38 }
 0x4ba   : > { %1417 = vst [vmem:[#allocation5] sm:$0xff] %v1401_v40  ;;  %v2036_v51 = vpop.f32.mrb[0].mxu1 }
 0x4bb   : > { %v1410_v52 = vadd.f32 %v2036_v51, %v1233_v49  ;;  %v1362_v61 = vpop.f32.mrb[1].mxu1 }
 0x4bc   : > { %v1409_v62 = vadd.f32 %v1362_v61, %v1232_v50 }
 0x4bd   : > { %1426 = vst [vmem:[#allocation5 + $0x48] sm:$0xff] %v1410_v52 }
 0x4be   : > { %1425 = vst [vmem:[#allocation5 + $0x40] sm:$0xff] %v1409_v62 }
 0x4c1   : > { %v2027_v33 = vpop.f32.mrb[2].mxu0  ;;  %v2039_v6 = vpop.f32.mrb[2].mxu1 }
 0x4c2   : > { %v1404_v31 = vadd.f32 %v2027_v33, %v1227_v63  ;;  %v1412_v35 = vadd.f32 %v2039_v6, %v1235_v0  ;;  %v1332_v25 = vpop.f32.mrb[3].mxu0  ;;  %v1372_v32 = vpop.f32.mrb[3].mxu1 }
 0x4c3   : > { %v1403_v36 = vadd.f32 %v1332_v25, %v1226_v9  ;;  %v1411_v3 = vadd.f32 %v1372_v32, %v1234_v29 }
 0x4c4   : > { %1420 = vst [vmem:[#allocation5 + $0x18] sm:$0xff] %v1404_v31  ;;  %1428 = vst [vmem:[#allocation5 + $0x58] sm:$0xff] %v1412_v35 }
 0x4c5   : > { %1419 = vst [vmem:[#allocation5 + $0x10] sm:$0xff] %v1403_v36  ;;  %1427 = vst [vmem:[#allocation5 + $0x50] sm:$0xff] %v1411_v3 }
 0x4c9   : > { %v2030_v43 = vpop.f32.mrb[4].mxu0  ;;  %v2042_v53 = vpop.f32.mrb[4].mxu1 }
 0x4ca   : > { %v1406_v28 = vadd.f32 %v2030_v43, %v1229_v57  ;;  %v1414_v47 = vadd.f32 %v2042_v53, %v1237_v44  ;;  %v1342_v48 = vpop.f32.mrb[5].mxu0  ;;  %v1382_v46 = vpop.f32.mrb[5].mxu1 }
 0x4cb   : > { %v1405_v26 = vadd.f32 %v1342_v48, %v1228_v56  ;;  %v1413_v45 = vadd.f32 %v1382_v46, %v1236_v54 }
 0x4cc   : > { %1422 = vst [vmem:[#allocation5 + $0x28] sm:$0xff] %v1406_v28  ;;  %1430 = vst [vmem:[#allocation5 + $0x68] sm:$0xff] %v1414_v47 }
 0x4cd   : > { %1421 = vst [vmem:[#allocation5 + $0x20] sm:$0xff] %v1405_v26  ;;  %1429 = vst [vmem:[#allocation5 + $0x60] sm:$0xff] %v1413_v45 }
 0x4d1   : > { %v2033_v42 = vpop.f32.mrb[6].mxu0  ;;  %v2045_v34 = vpop.f32.mrb[6].mxu1 }
 0x4d2   : > { %v1408_v1 = vadd.f32 %v2033_v42, %v1231_v55  ;;  %v1416_v41 = vadd.f32 %v2045_v34, %v1239_v59  ;;  %v1352_v4 = vpop.f32.mrb[7].mxu0  ;;  %v1392_v2 = vpop.f32.mrb[7].mxu1 }
 0x4d3   : > { %v1407_v60 = vadd.f32 %v1352_v4, %v1230_v10  ;;  %v1415_v58 = vadd.f32 %v1392_v2, %v1238_v30 }
 0x4d4   : > { %1424 = vst [vmem:[#allocation5 + $0x38] sm:$0xff] %v1408_v1  ;;  %1432 = vst [vmem:[#allocation5 + $0x78] sm:$0xff] %v1416_v41 }
 0x4d5   : > { %1423 = vst [vmem:[#allocation5 + $0x30] sm:$0xff] %v1407_v60  ;;  %1431 = vst [vmem:[#allocation5 + $0x70] sm:$0xff] %v1415_v58 }
 0x4d6 PF: > { %p1433_p7 = pnand %p1038_p3, %p949_p2 }
 0x4d7   : > { %v1437_v5 = vld [vmem:[#allocation5] sm:$0xff] (!%p1433_p7)  ;;  %s4836_s20 = sld [smem:[#allocation40_spill]] (!%p1433_p7)  ;;  %v1438_v7 = vld [vmem:[#allocation5 + $0x8] sm:$0xff] (!%p1433_p7)  ;;  %v1439_v12 = vld [vmem:[#allocation5 + $0x10] sm:$0xff] (!%p1433_p7) }
 0x4d8   : > { %1436 = sbr.rel (%p1433_p7) target bundleno = 1256 (0x4e8), region = 83  ;;  %v1440_v13 = vld [vmem:[#allocation5 + $0x18] sm:$0xff] (!%p1433_p7)  ;;  %v1441_v14 = vld [vmem:[#allocation5 + $0x20] sm:$0xff] (!%p1433_p7)  ;;  %v1442_v18 = vld [vmem:[#allocation5 + $0x28] sm:$0xff] (!%p1433_p7) }
 0x4d9   : > { %v1445_v24 = vld [vmem:[#allocation5 + $0x40] sm:$0xff] (!%p1433_p7)  ;;  %v1446_v37 = vld [vmem:[#allocation5 + $0x48] sm:$0xff] (!%p1433_p7)  ;;  %v1447_v38 = vld [vmem:[#allocation5 + $0x50] sm:$0xff] (!%p1433_p7) }
 0x4da   : > { %v1448_v50 = vld [vmem:[#allocation5 + $0x58] sm:$0xff] (!%p1433_p7)  ;;  %v1449_v51 = vld [vmem:[#allocation5 + $0x60] sm:$0xff] (!%p1433_p7)  ;;  %v1450_v52 = vld [vmem:[#allocation5 + $0x68] sm:$0xff] (!%p1433_p7) }
 0x4db   : > { %v1444_v20 = vld [vmem:[#allocation5 + $0x38] sm:$0xff] (!%p1433_p7) }
 0x4dc   : > { %v1443_v19 = vld [vmem:[#allocation5 + $0x30] sm:$0xff] (!%p1433_p7)  ;;  %v1452_v9 = vld [vmem:[#allocation5 + $0x78] sm:$0xff] (!%p1433_p7) }
 0x4dd   : > { %v1862_v27 = vld [vmem:[%s4836_s20] ss:$0 sm:$0xff] (!%p1433_p7)  ;;  %v1451_v0 = vld [vmem:[#allocation5 + $0x70] sm:$0xff] (!%p1433_p7) }
 0x4de   : > { %v1460_v8 = vadd.f32 (!%p1433_p7), %v1862_v27, %v1437_v5  ;;  %v1461_v11 = vadd.f32 (!%p1433_p7), %v1862_v27, %v1438_v7  ;;  %v1462_v15 = vadd.f32 (!%p1433_p7), %v1862_v27, %v1439_v12  ;;  %v1463_v16 = vadd.f32 (!%p1433_p7), %v1862_v27, %v1440_v13 }
 0x4df   : > { %v1464_v17 = vadd.f32 %v1862_v27, %v1441_v14  ;;  %v1465_v21 = vadd.f32 %v1862_v27, %v1442_v18  ;;  %v1466_v22 = vadd.f32 %v1862_v27, %v1443_v19  ;;  %v1467_v23 = vadd.f32 %v1862_v27, %v1444_v20 }
 0x4e0   : > { %1476 = vst [vmem:[#allocation13] sm:$0xff] %v1460_v8  ;;  %1477 = vst [vmem:[#allocation13 + $0x8] sm:$0xff] %v1461_v11  ;;  %v1468_v39 = vadd.f32 %v1862_v27, %v1445_v24  ;;  %v1469_v40 = vadd.f32 %v1862_v27, %v1446_v37  ;;  %v1470_v49 = vadd.f32 %v1862_v27, %v1447_v38 }
 0x4e1   : > { %1478 = vst [vmem:[#allocation13 + $0x10] sm:$0xff] %v1462_v15  ;;  %1479 = vst [vmem:[#allocation13 + $0x18] sm:$0xff] %v1463_v16  ;;  %v1471_v61 = vadd.f32 %v1862_v27, %v1448_v50  ;;  %v1472_v62 = vadd.f32 %v1862_v27, %v1449_v51  ;;  %v1473_v63 = vadd.f32 %v1862_v27, %v1450_v52 }
 0x4e2   : > { %1480 = vst [vmem:[#allocation13 + $0x20] sm:$0xff] %v1464_v17  ;;  %1481 = vst [vmem:[#allocation13 + $0x28] sm:$0xff] %v1465_v21  ;;  %v1474_v29 = vadd.f32 %v1862_v27, %v1451_v0  ;;  %v1475_v33 = vadd.f32 %v1862_v27, %v1452_v9 }
 0x4e3   : > { %1482 = vst [vmem:[#allocation13 + $0x30] sm:$0xff] %v1466_v22  ;;  %1483 = vst [vmem:[#allocation13 + $0x38] sm:$0xff] %v1467_v23 }
 0x4e4   : > { %1484 = vst [vmem:[#allocation13 + $0x40] sm:$0xff] %v1468_v39  ;;  %1485 = vst [vmem:[#allocation13 + $0x48] sm:$0xff] %v1469_v40 }
 0x4e5   : > { %1486 = vst [vmem:[#allocation13 + $0x50] sm:$0xff] %v1470_v49  ;;  %1487 = vst [vmem:[#allocation13 + $0x58] sm:$0xff] %v1471_v61 }
 0x4e6   : > { %1488 = vst [vmem:[#allocation13 + $0x60] sm:$0xff] %v1472_v62  ;;  %1489 = vst [vmem:[#allocation13 + $0x68] sm:$0xff] %v1473_v63 }
 0x4e7   : > { %1490 = vst [vmem:[#allocation13 + $0x70] sm:$0xff] %v1474_v29  ;;  %1491 = vst [vmem:[#allocation13 + $0x78] sm:$0xff] %v1475_v33 }
 0x4e8 PF: > { %s3321_s11 = smov [#allocation13]   ;;  %p4837_p4 = scmp.eq.s32.totalorder %s3489_s12, 3 }
 0x4e9   : > { %s1506_s27 = sshll.u32 %s3321_s11, 4  ;;  %s1507_s27 = int_to_ptr.vmem [resolvable:$true] %s1506_s27 }
 0x4ea   : > { %s2758_s2 = scalar_lea.vmem %s1507_s27, 2048  ;;  %p2765_p11 = scmp.lt.s32.totalorder %s1507_s27, %s1507_s27 }
 0x4eb   : > { %p2759_p5 = scmp.ne.s32.totalorder %s1507_s27, %s2758_s2  ;;  %p2766_p6 = scmp.lt.s32.totalorder %s2758_s2, %s2758_s2 }
 0x4ed   : > { %p2760_p8 = pnand %p2759_p5, %p4837_p4  ;;  %p2767_p13 = por %p2766_p6, %p2765_p11 }
 0x4ef   : > { %p2761_p0 = pneg %p2760_p8 }
 0x4f1   : > { %p2768_p2 = pnand %p2767_p13, %p2761_p0 }
 0x4f3   : > { %2771 = shalt.err (!%p2768_p2)
}
 0x4f4   : > { %s4838_s5 = sld [smem:[#allocation41_spill]]  ;;  %p4839_p3 = pmov %p4837_p4 }
 0x4fa   : > { %s2772_s29 = scalar_lea.hbm %s4838_s5, 2048 }
 0x4fb   : > { %p2773_p9 = scmp.ne.s32.totalorder %s4838_s5, %s2772_s29  ;;  %p2778_p7 = scmp.lt.u32.totalorder %s2772_s29, %s4838_s5 }
 0x4fd   : > { %p2774_p10 = pnand %p2773_p9, %p4839_p3 }
 0x4ff   : > { %p2775_p1 = pneg %p2774_p10 }
 0x501   : > { %p2780_p5 = pnand %p2778_p7, %p2775_p1 }
 0x503   : > { %2783 = shalt.err (!%p2780_p5)
}
 0x504   : > { %s3322_s1 = smov 128   ;;  %s4840_s4 = sld [smem:[#allocation21_spill]] }
 0x505   : > { %s3323_s16 = smov 8   ;;  %p4841_p4 = pmov %p4839_p3 }
 0x506   : > { %s1525_s30 = sshll.u32 %s3662_s18, 4  ;;  %s4842_s10 = sld [smem:[#allocation42_spill]]  ;;  %s4627_s30 = int_to_ptr.vmem [resolvable:$true] %s1525_s30 }
 0x507   : > { %2151 = dma.vmem_to_hbm [thread:$0]  (%p4841_p4), %s1507_s27, 2048, %s4838_s5, [#allocation9], %s3322_s1, %s3322_s1, %s3323_s16  }
 0x508   : > { %s4636_s15 = scalar_lea.sflag [#allocation15], %s345_s6  ;;  %s2784_s3 = scalar_lea.vmem %s4627_s30, 2048 }
 0x509   : > { %p2785_p8 = scmp.ne.s32.totalorder %s4627_s30, %s2784_s3 }
 0x50a   : > { %s1516_s2 = smul.u32 %s4840_s4, %s3102_s28  ;;  %s3324_s28 = smov [#allocation14]  }
 0x50b   : > { %p2786_p0 = pnand %p2785_p8, %p3575_p12  ;;  %s2788_s18 = sshll.u32 %s3324_s28, 4  ;;  %s2789_s18 = int_to_ptr.vmem [resolvable:$false] %s2788_s18 }
 0x50c   : > { %s1865_s13 = sshll.u32 %s1516_s2, 7  ;;  %s2790_s27 = scalar_lea.vmem %s2789_s18, 4096 }
 0x50d   : > { %s4632_s0 = scalar_lea.hbm %s4842_s10, %s1865_s13  ;;  %p2787_p11 = pneg %p2786_p0 }
 0x50e   : > { %p2791_p6 = scmp.lt.s32.totalorder %s4627_s30, %s2789_s18  ;;  %p2792_p13 = scmp.lt.s32.totalorder %s2790_s27, %s2784_s3 }
 0x510   : > { %p2793_p2 = por %p2792_p13, %p2791_p6 }
 0x512   : > { %p2794_p9 = pnand %p2793_p2, %p2787_p11 }
 0x514   : > { %2797 = shalt.err (!%p2794_p9)
}
 0x515   : > { %s2798_s6 = scalar_lea.hbm %s4632_s0, 2048  ;;  %s2802_s11 = scalar_lea.hbm %s4842_s10, 4096 }
 0x516   : > { %p2799_p3 = scmp.ne.s32.totalorder %s4632_s0, %s2798_s6  ;;  %p2803_p7 = scmp.lt.u32.totalorder %s4632_s0, %s4842_s10 }
 0x517   : > { %p2804_p5 = scmp.lt.u32.totalorder %s2802_s11, %s2798_s6  ;;  %p2806_p8 = scmp.lt.u32.totalorder %s2798_s6, %s4632_s0 }
 0x518   : > { %p2800_p10 = pnand %p2799_p3, %p3575_p12 }
 0x519   : > { %p2805_p4 = por %p2804_p5, %p2803_p7 }
 0x51a   : > { %p2801_p1 = pneg %p2800_p10 }
 0x51b   : > { %p2807_p0 = por %p2806_p8, %p2805_p4 }
 0x51d   : > { %p2808_p11 = pnand %p2807_p0, %p2801_p1 }
 0x51f   : > { %2811 = shalt.err (!%p2808_p11)
}
 0x520   : > { %s3325_s3 = smov 256   ;;  %p4843_p6 = scmp.eq.s32.totalorder %s3489_s12, 3 }
 0x521   : > { %2152 = dma.vmem_to_hbm [thread:$0]  (%p3575_p12), %s4627_s30, 2048, %s4632_s0, %s4636_s15, %s3322_s1, %s3325_s3, %s3323_s16  }
 0x522   : > { %3065 = dma.done.wait (%p4843_p6), [#allocation9], 2048   ;;  %p4844_p13 = pmov %p4843_p6 }
 0x524   : > { %3067 = vsyncadd (%p4844_p13), [#allocation9], 4294965248 }
 0x525 PF: > { %p2176_p2 = scmp.ge.s32.totalorder %s3114_s7, 2  ;;  %s1544_s29 = sand.u32 1, %s3074_s21  }
 0x526   : > { %p4845_p9 = scmp.ne.s32.totalorder %s4752_s24, 0  ;;  %s1545_s14 = scalar_lea.sflag [#allocation15], %s1544_s29 }
 0x528   : > { %p2168_p3 = pnand %p2176_p2, %p4845_p9 }
 0x52a   : > { %3069 = dma.done.wait (!%p2168_p3), %s1545_s14, 2048  }
 0x52b   : > { %3071 = vsyncadd (!%p2168_p3), %s1545_s14, 4294965248  ;;  %s25_s7 = sadd.s32 1, %s3114_s7   ;;  %s4846_s12 = sld [smem:[#allocation24_spill]] }
 0x52c   : > { %p22_p10 = scmp.ge.s32.totalorder %s25_s7, 6   ;;  %s4847_s27 = sld [smem:[#allocation22_spill]] }
 0x52d   : > { %s4848_s28 = sld [smem:[#allocation23_spill]]  ;;  %s4849_s21 = smov %s3078_s22 }
 0x52e   : > { %s4850_s22 = smov %s3082_s23  ;;  %s4851_s23 = smov %s3580_s19 }
 0x52f   : > { %s4852_s24 = smov %s3090_s25  ;;  %s4853_s25 = smov %s3094_s26 }
 0x530   : > { %s4855_s29 = smov %s4858_s8  ;;  %s4856_s30 = smov %s4862_s9 }
 0x531   : > { %s4854_s26 = smov %s4846_s12  ;;  %24 = sbr.rel (!%p22_p10) target bundleno = 19 (0x13), region = 159 }
 0x538   :  { %1550 = vsyncpa [#allocation8], 1 }
 0x539   :  { %1552 = vsyncpa [#allocation8 + $0x1], 1 }
 0x53a   :  { %1553 = vsyncpa [#allocation11], 1 }
 0x53b   :  { %1555 = vsyncpa [#allocation11 + $0x1], 1 }
 0x53c   :  { %1556 = vsyncpa [#allocation9], 1 }
 0x53d   :  { %1558 = vsyncpa [#allocation9 + $0x1], 1 }
 0x53e   :  { %1559 = vsyncpa [#allocation15], 1 }
 0x53f   :  { %1561 = vsyncpa [#allocation15 + $0x1], 1 }

</bundles_post_ra>
